<compile_context>
chip_gen: v7x
topology: tpu7x:2x2x1
jax: 0.10.0
libtpu: 0.0.40
codegen_flags: <defaults>
</compile_context>

<pallas_src>
import functools

import jax
import jax.numpy as jnp
from jax import lax
from jax.experimental import pallas as pl
from jax.experimental.pallas import tpu as pltpu


def _down_kernel(x_ref, w_ref, b_ref, o_ref, pad_ref, *,
                 Nb, Cin, Cout, H, W, Hp, Wp, neg_slope):
    # x_ref  : (Nb, Cin, H, W)        input block, NCHW (W on lanes)
    # w_ref  : (Cout, 9*Cin)          packed conv weight, col index = (ki*3+kj)*Cin + ci
    # b_ref  : (Cout, 1)
    # o_ref  : (Nb, Cout, Hp*Wp)      output block, spatial flattened onto lanes
    # pad_ref: (Nb*Cin, Hp+2, Wp+2)   zero-padded pooled map (scratch, persists over grid)
    f32 = jnp.float32

    # Zero the padded scratch only once: the interior is fully overwritten every grid step
    # and the 1-pixel border is never written, so no per-step full zero-fill is needed.
    @pl.when(pl.program_id(0) == 0)
    def _init():
        pad_ref[...] = jnp.zeros_like(pad_ref)

    # Single full-block load; rows = (n, ci, h), lanes = w.  (H is a multiple of 8, so this
    # reshape only collapses major dims and is layout-trivial.)
    x = x_ref[...].astype(f32).reshape(Nb * Cin * H, W)

    # ---- 2x2 max pool, stride 2, via 0/1 selection matmuls + elementwise max -------------
    # (Exact for finite inputs: each dot just picks one element per output.)
    iw = lax.broadcasted_iota(jnp.int32, (W, Wp), 0)
    jw = lax.broadcasted_iota(jnp.int32, (W, Wp), 1)
    s_we = (iw == 2 * jw).astype(f32)            # picks even columns
    s_wo = (iw == 2 * jw + 1).astype(f32)        # picks odd  columns
    mw = jnp.maximum(jnp.dot(x, s_we, preferred_element_type=f32),
                     jnp.dot(x, s_wo, preferred_element_type=f32))       # (Nb*Cin*H, Wp)

    # Row (height) decimation: because H == 2*Hp, global source row for output row r is
    # exactly 2r / 2r+1, so one global selection matrix handles all (n, ci) slabs at once.
    R, C = Nb * Cin * Hp, Nb * Cin * H
    ir = lax.broadcasted_iota(jnp.int32, (R, C), 0)
    ic = lax.broadcasted_iota(jnp.int32, (R, C), 1)
    s_he = (ic == 2 * ir).astype(f32)            # picks even rows
    s_ho = (ic == 2 * ir + 1).astype(f32)        # picks odd  rows
    pooled = jnp.maximum(jnp.dot(s_he, mw, preferred_element_type=f32),
                         jnp.dot(s_ho, mw, preferred_element_type=f32))  # (Nb*Cin*Hp, Wp)

    # ---- write pooled interior into the zero-padded scratch (padding = 1) ----------------
    pad_ref[:, 1:Hp + 1, 1:Wp + 1] = pooled.reshape(Nb * Cin, Hp, Wp)

    padv = pad_ref[...]                          # (Nb*Cin, Hp+2, Wp+2)
    w_mat = w_ref[...].astype(f32)               # (Cout, 9*Cin)
    bias = b_ref[...].astype(f32)                # (Cout, 1)

    # ---- 3x3 conv: one im2col matmul per image, output lane-dense in spatial --------------
    outs = []
    for n in range(Nb):
        pn = padv[n * Cin:(n + 1) * Cin]         # (Cin, Hp+2, Wp+2)
        taps = [pn[:, ki:ki + Hp, kj:kj + Wp]    # static contiguous slices
                for ki in range(3) for kj in range(3)]
        # row index = (ki*3+kj)*Cin + ci ; lane index = i*Wp + j
        patches = jnp.concatenate(taps, axis=0).reshape(9 * Cin, Hp * Wp)
        y = jnp.dot(w_mat, patches, preferred_element_type=f32) + bias   # (Cout, Hp*Wp)
        y = jnp.where(y > 0, y, neg_slope * y)                           # LeakyReLU(0.01)
        outs.append(y)

    o_ref[...] = jnp.stack(outs, axis=0).astype(o_ref.dtype)


def down_forward(x_nchw, w_oihw, bias, *, neg_slope=0.01):
    """Down(in_ch, out_ch, n_convrelu_layers=1) forward. Input/output are NCHW."""
    N, Cin, H, W = x_nchw.shape
    Cout = w_oihw.shape[0]
    Hp, Wp = H // 2, W // 2
    # MaxPool2d(2) uses floor mode: drop a trailing odd row/column if present.
    if (H % 2) or (W % 2):
        x_nchw = x_nchw[:, :, :2 * Hp, :2 * Wp]
    H, W = 2 * Hp, 2 * Wp

    # Fold several images into each grid step (amortizes ~0.35us/step overhead) while
    # keeping the input block modest.
    itemsize = jnp.dtype(x_nchw.dtype).itemsize
    Nb = next((d for d in (8, 4, 2, 1)
               if N % d == 0 and d * Cin * H * W * itemsize <= (8 << 20)), 1)

    # Pack weights once: (Cout, Cin, 3, 3) -> (Cout, (ki*3+kj)*Cin + ci). Tiny tensor.
    w_mat = jnp.transpose(w_oihw, (0, 2, 3, 1)).reshape(Cout, 9 * Cin).astype(jnp.float32)
    b2 = bias.reshape(Cout, 1).astype(jnp.float32)

    kern = functools.partial(_down_kernel, Nb=Nb, Cin=Cin, Cout=Cout,
                             H=H, W=W, Hp=Hp, Wp=Wp, neg_slope=neg_slope)

    out_flat = pl.pallas_call(
        kern,
        out_shape=jax.ShapeDtypeStruct((N, Cout, Hp * Wp), x_nchw.dtype),
        grid_spec=pltpu.PrefetchScalarGridSpec(
            num_scalar_prefetch=0,
            grid=(N // Nb,),
            in_specs=[
                pl.BlockSpec((Nb, Cin, H, W), lambda b: (b, 0, 0, 0)),
                pl.BlockSpec((Cout, 9 * Cin), lambda b: (0, 0)),
                pl.BlockSpec((Cout, 1), lambda b: (0, 0)),
            ],
            out_specs=pl.BlockSpec((Nb, Cout, Hp * Wp), lambda b: (b, 0, 0)),
            scratch_shapes=[pltpu.VMEM((Nb * Cin, Hp + 2, Wp + 2), jnp.float32)],
        ),
        compiler_params=pltpu.CompilerParams(
            dimension_semantics=("parallel",),
            vmem_limit_bytes=32 * 1024 * 1024),
    )(x_nchw, w_mat, b2)

    # Free, contiguous reshape back to NCHW — no activation transposes anywhere.
    return out_flat.reshape(N, Cout, Hp, Wp)


def down_reference(x_nchw, w_oihw, bias, *, neg_slope=0.01):
    """Pure-JAX reference (matches PyTorch semantics) for verification."""
    pooled = lax.reduce_window(
        x_nchw, -jnp.inf, lax.max,
        window_dimensions=(1, 1, 2, 2), window_strides=(1, 1, 2, 2),
        padding="VALID")
    y = lax.conv_general_dilated(
        pooled, w_oihw, window_strides=(1, 1), padding=((1, 1), (1, 1)),
        dimension_numbers=("NCHW", "OIHW", "NCHW"))
    y = y + bias.reshape(1, -1, 1, 1)
    return jnp.where(y > 0, y, neg_slope * y)


if __name__ == "__main__":
    # Small shapes consistent with Down(in_channels=4, out_channels=8)
    N, Cin, H, W = 2, 4, 16, 16
    Cout = 8

    key = jax.random.PRNGKey(0)
    kx, kw, kb = jax.random.split(key, 3)

    x = jax.random.normal(kx, (N, Cin, H, W), dtype=jnp.float32)

    # Deterministic parameter init (PyTorch-like uniform bounds, fan_in = Cin*3*3)
    fan_in = Cin * 3 * 3
    bound = 1.0 / (fan_in ** 0.5)
    w = jax.random.uniform(kw, (Cout, Cin, 3, 3), jnp.float32, -bound, bound)
    b = jax.random.uniform(kb, (Cout,), jnp.float32, -bound, bound)

    out = jax.block_until_ready(down_forward(x, w, b))
    ref = down_reference(x, w, b)

    assert out.shape == (N, Cout, H // 2, W // 2), out.shape
    err = float(jnp.max(jnp.abs(out - ref)))
    assert err < 1e-4, err

    print("KERNEL_OK")
</pallas_src>

<mosaic_0001>
module attributes {stable_mosaic.version = 11 : i64} {
  func.func @_down_kernel(%arg0: i32, %arg1: memref<2x4x16x16xf32, #tpu.memory_space<vmem>>, %arg2: memref<8x36xf32, #tpu.memory_space<vmem>>, %arg3: memref<8x1xf32, #tpu.memory_space<vmem>>, %arg4: memref<2x8x64xf32, #tpu.memory_space<vmem>>, %arg5: memref<8x10x10xf32, #tpu.memory_space<vmem>>) attributes {dimension_semantics = [#tpu.dimension_semantics<parallel>], iteration_bounds = array<i64: 1>, scalar_prefetch = 0 : i64, scratch_operands = 1 : i64, tpu.core_type = #tpu.core_type<tc>, window_params = [{transform_indices = @transform_0, window_bounds = array<i64: 2, 4, 16, 16>}, {pipeline_mode = #tpu.pipeline_mode<synchronous>, transform_indices = @transform_1, window_bounds = array<i64: 8, 36>}, {pipeline_mode = #tpu.pipeline_mode<synchronous>, transform_indices = @transform_2, window_bounds = array<i64: 8, 1>}, {transform_indices = @transform_3, window_bounds = array<i64: 2, 8, 64>}]} {
    %c0_i32 = arith.constant 0 : i32
    %0 = arith.cmpi eq, %arg0, %c0_i32 : i32
    %1 = arith.extui %0 : i1 to i32
    %c0_i32_0 = arith.constant 0 : i32
    %2 = arith.cmpi ne, %1, %c0_i32_0 : i32
    scf.if %2 {
      %cst_29 = arith.constant 0.000000e+00 : f32
      %88 = vector.broadcast %cst_29 : f32 to vector<8x10x10xf32>
      %c0_30 = arith.constant 0 : index
      %c0_31 = arith.constant 0 : index
      %c0_32 = arith.constant 0 : index
      %89 = vector.load %arg5[%c0_30, %c0_31, %c0_32] : memref<8x10x10xf32, #tpu.memory_space<vmem>>, vector<8x10x10xf32>
      tpu.vector_store %arg5[%c0_30, %c0_31, %c0_32], %88 {strides = array<i32>} : memref<8x10x10xf32, #tpu.memory_space<vmem>>, vector<8x10x10xf32>,
    } else {
    }
    %c0 = arith.constant 0 : index
    %c0_1 = arith.constant 0 : index
    %c0_2 = arith.constant 0 : index
    %c0_3 = arith.constant 0 : index
    %3 = vector.load %arg1[%c0, %c0_1, %c0_2, %c0_3] : memref<2x4x16x16xf32, #tpu.memory_space<vmem>>, vector<2x4x16x16xf32>
    %4 = vector.shape_cast %3 : vector<2x4x16x16xf32> to vector<128x16xf32>
    %5 = tpu.iota {dimensions = array<i32: 0>} : vector<16x8xi32>
    %6 = tpu.iota {dimensions = array<i32: 1>} : vector<16x8xi32>
    %c2_i32 = arith.constant 2 : i32
    %7 = vector.broadcast %c2_i32 : i32 to vector<16x8xi32>
    %8 = arith.muli %7, %6 : vector<16x8xi32>
    %9 = arith.cmpi eq, %5, %8 : vector<16x8xi32>
    %10 = arith.extui %9 : vector<16x8xi1> to vector<16x8xi32>
    %11 = arith.sitofp %10 : vector<16x8xi32> to vector<16x8xf32>
    %c2_i32_4 = arith.constant 2 : i32
    %12 = vector.broadcast %c2_i32_4 : i32 to vector<16x8xi32>
    %13 = arith.muli %12, %6 : vector<16x8xi32>
    %c1_i32 = arith.constant 1 : i32
    %14 = vector.broadcast %c1_i32 : i32 to vector<16x8xi32>
    %15 = arith.addi %13, %14 : vector<16x8xi32>
    %16 = arith.cmpi eq, %5, %15 : vector<16x8xi32>
    %17 = arith.extui %16 : vector<16x8xi1> to vector<16x8xi32>
    %18 = arith.sitofp %17 : vector<16x8xi32> to vector<16x8xf32>
    %cst = arith.constant dense<0.000000e+00> : vector<128x8xf32>
    %19 = tpu.matmul %4, %11, %cst {dimension_numbers = #tpu.dot_dimension_numbers<[1], [0], [0], [1], [0, 0, 1, 1], [], []>} : vector<128x16xf32>, vector<16x8xf32>, vector<128x8xf32> -> vector<128x8xf32>
    %cst_5 = arith.constant dense<0.000000e+00> : vector<128x8xf32>
    %20 = tpu.matmul %4, %18, %cst_5 {dimension_numbers = #tpu.dot_dimension_numbers<[1], [0], [0], [1], [0, 0, 1, 1], [], []>} : vector<128x16xf32>, vector<16x8xf32>, vector<128x8xf32> -> vector<128x8xf32>
    %21 = arith.maximumf %19, %20 : vector<128x8xf32>
    %22 = tpu.iota {dimensions = array<i32: 0>} : vector<64x128xi32>
    %23 = tpu.iota {dimensions = array<i32: 1>} : vector<64x128xi32>
    %c2_i32_6 = arith.constant 2 : i32
    %24 = vector.broadcast %c2_i32_6 : i32 to vector<64x128xi32>
    %25 = arith.muli %24, %22 : vector<64x128xi32>
    %26 = arith.cmpi eq, %23, %25 : vector<64x128xi32>
    %27 = arith.extui %26 : vector<64x128xi1> to vector<64x128xi32>
    %28 = arith.sitofp %27 : vector<64x128xi32> to vector<64x128xf32>
    %c2_i32_7 = arith.constant 2 : i32
    %29 = vector.broadcast %c2_i32_7 : i32 to vector<64x128xi32>
    %30 = arith.muli %29, %22 : vector<64x128xi32>
    %c1_i32_8 = arith.constant 1 : i32
    %31 = vector.broadcast %c1_i32_8 : i32 to vector<64x128xi32>
    %32 = arith.addi %30, %31 : vector<64x128xi32>
    %33 = arith.cmpi eq, %23, %32 : vector<64x128xi32>
    %34 = arith.extui %33 : vector<64x128xi1> to vector<64x128xi32>
    %35 = arith.sitofp %34 : vector<64x128xi32> to vector<64x128xf32>
    %cst_9 = arith.constant dense<0.000000e+00> : vector<64x8xf32>
    %36 = tpu.matmul %28, %21, %cst_9 {dimension_numbers = #tpu.dot_dimension_numbers<[1], [0], [0], [1], [0, 0, 1, 1], [], []>} : vector<64x128xf32>, vector<128x8xf32>, vector<64x8xf32> -> vector<64x8xf32>
    %cst_10 = arith.constant dense<0.000000e+00> : vector<64x8xf32>
    %37 = tpu.matmul %35, %21, %cst_10 {dimension_numbers = #tpu.dot_dimension_numbers<[1], [0], [0], [1], [0, 0, 1, 1], [], []>} : vector<64x128xf32>, vector<128x8xf32>, vector<64x8xf32> -> vector<64x8xf32>
    %38 = arith.maximumf %36, %37 : vector<64x8xf32>
    %39 = vector.shape_cast %38 : vector<64x8xf32> to vector<8x8x8xf32>
    %c0_11 = arith.constant 0 : index
    %c1 = arith.constant 1 : index
    %c1_12 = arith.constant 1 : index
    %40 = vector.load %arg5[%c0_11, %c1, %c1_12] : memref<8x10x10xf32, #tpu.memory_space<vmem>>, vector<8x8x8xf32>
    tpu.vector_store %arg5[%c0_11, %c1, %c1_12], %39 {strides = array<i32>} : memref<8x10x10xf32, #tpu.memory_space<vmem>>, vector<8x8x8xf32>,
    %c0_13 = arith.constant 0 : index
    %c0_14 = arith.constant 0 : index
    %c0_15 = arith.constant 0 : index
    %41 = vector.load %arg5[%c0_13, %c0_14, %c0_15] : memref<8x10x10xf32, #tpu.memory_space<vmem>>, vector<8x10x10xf32>
    %c0_16 = arith.constant 0 : index
    %c0_17 = arith.constant 0 : index
    %42 = vector.load %arg2[%c0_16, %c0_17] : memref<8x36xf32, #tpu.memory_space<vmem>>, vector<8x36xf32>
    %c0_18 = arith.constant 0 : index
    %c0_19 = arith.constant 0 : index
    %43 = vector.load %arg3[%c0_18, %c0_19] : memref<8x1xf32, #tpu.memory_space<vmem>>, vector<8x1xf32>
    %44 = vector.extract_strided_slice %41 {offsets = [0, 0, 0], sizes = [4, 10, 10], strides = [1, 1, 1]} : vector<8x10x10xf32> to vector<4x10x10xf32>
    %45 = vector.extract_strided_slice %44 {offsets = [0, 0, 0], sizes = [4, 8, 8], strides = [1, 1, 1]} : vector<4x10x10xf32> to vector<4x8x8xf32>
    %46 = vector.extract_strided_slice %44 {offsets = [0, 0, 1], sizes = [4, 8, 8], strides = [1, 1, 1]} : vector<4x10x10xf32> to vector<4x8x8xf32>
    %47 = vector.extract_strided_slice %44 {offsets = [0, 0, 2], sizes = [4, 8, 8], strides = [1, 1, 1]} : vector<4x10x10xf32> to vector<4x8x8xf32>
    %48 = vector.extract_strided_slice %44 {offsets = [0, 1, 0], sizes = [4, 8, 8], strides = [1, 1, 1]} : vector<4x10x10xf32> to vector<4x8x8xf32>
    %49 = vector.extract_strided_slice %44 {offsets = [0, 1, 1], sizes = [4, 8, 8], strides = [1, 1, 1]} : vector<4x10x10xf32> to vector<4x8x8xf32>
    %50 = vector.extract_strided_slice %44 {offsets = [0, 1, 2], sizes = [4, 8, 8], strides = [1, 1, 1]} : vector<4x10x10xf32> to vector<4x8x8xf32>
    %51 = vector.extract_strided_slice %44 {offsets = [0, 2, 0], sizes = [4, 8, 8], strides = [1, 1, 1]} : vector<4x10x10xf32> to vector<4x8x8xf32>
    %52 = vector.extract_strided_slice %44 {offsets = [0, 2, 1], sizes = [4, 8, 8], strides = [1, 1, 1]} : vector<4x10x10xf32> to vector<4x8x8xf32>
    %53 = vector.extract_strided_slice %44 {offsets = [0, 2, 2], sizes = [4, 8, 8], strides = [1, 1, 1]} : vector<4x10x10xf32> to vector<4x8x8xf32>
    %54 = tpu.concatenate %45, %46, %47, %48, %49, %50, %51, %52, %53 in 0 : vector<4x8x8xf32>, vector<4x8x8xf32>, vector<4x8x8xf32>, vector<4x8x8xf32>, vector<4x8x8xf32>, vector<4x8x8xf32>, vector<4x8x8xf32>, vector<4x8x8xf32>, vector<4x8x8xf32> -> vector<36x8x8xf32>
    %55 = vector.shape_cast %54 : vector<36x8x8xf32> to vector<36x64xf32>
    %cst_20 = arith.constant dense<0.000000e+00> : vector<8x64xf32>
    %56 = tpu.matmul %42, %55, %cst_20 {dimension_numbers = #tpu.dot_dimension_numbers<[1], [0], [0], [1], [0, 0, 1, 1], [], []>} : vector<8x36xf32>, vector<36x64xf32>, vector<8x64xf32> -> vector<8x64xf32>
    %57 = vector.broadcast %43 : vector<8x1xf32> to vector<8x64xf32>
    %58 = arith.addf %56, %57 : vector<8x64xf32>
    %cst_21 = arith.constant 0.000000e+00 : f32
    %59 = vector.broadcast %cst_21 : f32 to vector<8x64xf32>
    %60 = arith.cmpf ogt, %58, %59 : vector<8x64xf32>
    %cst_22 = arith.constant 0.00999999977 : f32
    %61 = vector.broadcast %cst_22 : f32 to vector<8x64xf32>
    %62 = arith.mulf %61, %58 : vector<8x64xf32>
    %63 = arith.select %60, %58, %62 : vector<8x64xi1>, vector<8x64xf32>
    %64 = vector.extract_strided_slice %41 {offsets = [4, 0, 0], sizes = [4, 10, 10], strides = [1, 1, 1]} : vector<8x10x10xf32> to vector<4x10x10xf32>
    %65 = vector.extract_strided_slice %64 {offsets = [0, 0, 0], sizes = [4, 8, 8], strides = [1, 1, 1]} : vector<4x10x10xf32> to vector<4x8x8xf32>
    %66 = vector.extract_strided_slice %64 {offsets = [0, 0, 1], sizes = [4, 8, 8], strides = [1, 1, 1]} : vector<4x10x10xf32> to vector<4x8x8xf32>
    %67 = vector.extract_strided_slice %64 {offsets = [0, 0, 2], sizes = [4, 8, 8], strides = [1, 1, 1]} : vector<4x10x10xf32> to vector<4x8x8xf32>
    %68 = vector.extract_strided_slice %64 {offsets = [0, 1, 0], sizes = [4, 8, 8], strides = [1, 1, 1]} : vector<4x10x10xf32> to vector<4x8x8xf32>
    %69 = vector.extract_strided_slice %64 {offsets = [0, 1, 1], sizes = [4, 8, 8], strides = [1, 1, 1]} : vector<4x10x10xf32> to vector<4x8x8xf32>
    %70 = vector.extract_strided_slice %64 {offsets = [0, 1, 2], sizes = [4, 8, 8], strides = [1, 1, 1]} : vector<4x10x10xf32> to vector<4x8x8xf32>
    %71 = vector.extract_strided_slice %64 {offsets = [0, 2, 0], sizes = [4, 8, 8], strides = [1, 1, 1]} : vector<4x10x10xf32> to vector<4x8x8xf32>
    %72 = vector.extract_strided_slice %64 {offsets = [0, 2, 1], sizes = [4, 8, 8], strides = [1, 1, 1]} : vector<4x10x10xf32> to vector<4x8x8xf32>
    %73 = vector.extract_strided_slice %64 {offsets = [0, 2, 2], sizes = [4, 8, 8], strides = [1, 1, 1]} : vector<4x10x10xf32> to vector<4x8x8xf32>
    %74 = tpu.concatenate %65, %66, %67, %68, %69, %70, %71, %72, %73 in 0 : vector<4x8x8xf32>, vector<4x8x8xf32>, vector<4x8x8xf32>, vector<4x8x8xf32>, vector<4x8x8xf32>, vector<4x8x8xf32>, vector<4x8x8xf32>, vector<4x8x8xf32>, vector<4x8x8xf32> -> vector<36x8x8xf32>
    %75 = vector.shape_cast %74 : vector<36x8x8xf32> to vector<36x64xf32>
    %cst_23 = arith.constant dense<0.000000e+00> : vector<8x64xf32>
    %76 = tpu.matmul %42, %75, %cst_23 {dimension_numbers = #tpu.dot_dimension_numbers<[1], [0], [0], [1], [0, 0, 1, 1], [], []>} : vector<8x36xf32>, vector<36x64xf32>, vector<8x64xf32> -> vector<8x64xf32>
    %77 = vector.broadcast %43 : vector<8x1xf32> to vector<8x64xf32>
    %78 = arith.addf %76, %77 : vector<8x64xf32>
    %cst_24 = arith.constant 0.000000e+00 : f32
    %79 = vector.broadcast %cst_24 : f32 to vector<8x64xf32>
    %80 = arith.cmpf ogt, %78, %79 : vector<8x64xf32>
    %cst_25 = arith.constant 0.00999999977 : f32
    %81 = vector.broadcast %cst_25 : f32 to vector<8x64xf32>
    %82 = arith.mulf %81, %78 : vector<8x64xf32>
    %83 = arith.select %80, %78, %82 : vector<8x64xi1>, vector<8x64xf32>
    %84 = vector.shape_cast %63 : vector<8x64xf32> to vector<1x8x64xf32>
    %85 = vector.shape_cast %83 : vector<8x64xf32> to vector<1x8x64xf32>
    %86 = tpu.concatenate %84, %85 in 0 : vector<1x8x64xf32>, vector<1x8x64xf32> -> vector<2x8x64xf32>
    %c0_26 = arith.constant 0 : index
    %c0_27 = arith.constant 0 : index
    %c0_28 = arith.constant 0 : index
    %87 = vector.load %arg4[%c0_26, %c0_27, %c0_28] : memref<2x8x64xf32, #tpu.memory_space<vmem>>, vector<2x8x64xf32>
    tpu.vector_store %arg4[%c0_26, %c0_27, %c0_28], %86 {strides = array<i32>} : memref<2x8x64xf32, #tpu.memory_space<vmem>>, vector<2x8x64xf32>,
    return
  }
  func.func @transform_0(%arg0: i32) -> (i32, i32, i32, i32) {
    %c0_i32 = arith.constant 0 : i32
    %c0_i32_0 = arith.constant 0 : i32
    %c0_i32_1 = arith.constant 0 : i32
    %c0_i32_2 = arith.constant 0 : i32
    return %arg0, %c0_i32, %c0_i32_0, %c0_i32_1 : i32, i32, i32, i32
  }
  func.func @transform_1(%arg0: i32) -> (i32, i32) {
    %c0_i32 = arith.constant 0 : i32
    %c0_i32_0 = arith.constant 0 : i32
    %c0_i32_1 = arith.constant 0 : i32
    return %c0_i32, %c0_i32_0 : i32, i32
  }
  func.func @transform_2(%arg0: i32) -> (i32, i32) {
    %c0_i32 = arith.constant 0 : i32
    %c0_i32_0 = arith.constant 0 : i32
    %c0_i32_1 = arith.constant 0 : i32
    return %c0_i32, %c0_i32_0 : i32, i32
  }
  func.func @transform_3(%arg0: i32) -> (i32, i32, i32) {
    %c0_i32 = arith.constant 0 : i32
    %c0_i32_0 = arith.constant 0 : i32
    %c0_i32_1 = arith.constant 0 : i32
    return %arg0, %c0_i32, %c0_i32_0 : i32, i32, i32
  }
}

</mosaic_0001>

<bundles_post_ra>
// kernel: tpu_custom_call.1
= control target key start
LH: loop header
LB: loop body
LE: loop exit
PB: predicated region body
PF: predicated region fallthrough
CT: control target
= control target key end

     0   :  { %8 = vsyncpa [#allocation4], 0  ;;  %s4690_s0 = inlined_call_operand.hbm [shape: f32[2,4,16,16], index: 0, kind: input, shape index: {}]   ;;  %s4691_s1 = inlined_call_operand.vmem [shape: f32[8,36], index: 1, kind: input, shape index: {}]   ;;  %s4692_s2 = inlined_call_operand.vmem [shape: f32[8,1], index: 2, kind: input, shape index: {}]   ;;  %s4693_s3 = inlined_call_operand.hbm [shape: f32[2,8,64], index: 3, kind: output, shape index: {}]  }
   0x1   :  { %9 = vsyncpa [#allocation5], 0  ;;  %s3412_s12 = smov [#allocation3]   ;;  %s3364_s16 = scalar_lea.hbm %s4690_s0, 2048 }
   0x2   :  { %s15_s13 = sshll.u32 %s3412_s12, 4  ;;  %p3365_p0 = scmp.ne.s32.totalorder %s4690_s0, %s3364_s16  ;;  %s16_s13 = int_to_ptr.vmem [resolvable:$true] %s15_s13 }
   0x3   :  { %p3368_p1 = scmp.lt.u32.totalorder %s3364_s16, %s4690_s0 }
   0x5   :  { %p3370_p2 = pnand %p3368_p1, %p3365_p0 }
   0x7   :  { %3373 = shalt.err (!%p3370_p2)
}
   0x8   :  { %s3374_s21 = scalar_lea.vmem %s16_s13, 2048  ;;  %p3379_p4 = scmp.lt.s32.totalorder %s16_s13, %s16_s13 }
   0x9   :  { %p3375_p3 = scmp.ne.s32.totalorder %s16_s13, %s3374_s21  ;;  %p3380_p5 = scmp.lt.s32.totalorder %s3374_s21, %s3374_s21 }
   0xb   :  { %p3381_p6 = por %p3380_p5, %p3379_p4 }
   0xd   :  { %p3382_p7 = pnand %p3381_p6, %p3375_p3 }
   0xf   :  { %3385 = shalt.err (!%p3382_p7)
}
  0x10   :  { %s3413_s22 = smov 128   ;;  %s3414_s23 = smov 8  }
  0x11   :  { %21 = dma.hbm_to_vmem [thread:$0]  %s4690_s0, 2048, %s16_s13, [#allocation4], %s3413_s22, %s3413_s22, %s3414_s23  }
  0x12   :  { %3408 = dma.done.wait [#allocation4], 2048  }
  0x13   :  { %3409 = vsyncadd [#allocation4], 4294965248  ;;  %v67_v0 = vlaneseq  ;;  %vm86_vm0 = vcmask 130048   ;;  %v51_v6 = vld [vmem:[#allocation3] sm:$0xff]  ;;  %v3415_v7 = vmov 1.0|1.0  }
  0x14   :  { %2952 = vmatprep.mubr.msk.f32.mxu0 %vm86_vm0, %v51_v6  ;;  %v52_v8 = vld [vmem:[#allocation3 + $0x8] sm:$0xff]  ;;  %2980 = vmatprep.mubr.msk.f32.mxu1 %vm86_vm0, %v51_v6  ;;  %v53_v9 = vld [vmem:[#allocation3 + $0x10] sm:$0xff]  ;;  %v54_v10 = vld [vmem:[#allocation3 + $0x18] sm:$0xff]  ;;  %v3416_v25 = vmov 1.0   ;;  %s3418_s0 = smov 1   ;;  %s3419_s26 = smov 127  }
  0x15   :  { %v3468_v1 = vshrl.u32 %v67_v0, 7  ;;  %v3470_v2 = vand.u32 127, %v67_v0  ;;  %v55_v11 = vld [vmem:[#allocation3 + $0x20] sm:$0xff]  ;;  %v56_v12 = vld [vmem:[#allocation3 + $0x28] sm:$0xff]  ;;  %v57_v13 = vld [vmem:[#allocation3 + $0x30] sm:$0xff]  ;;  %s3421_s27 = smov 126  }
  0x16   :  { %v58_v14 = vld [vmem:[#allocation3 + $0x38] sm:$0xff]  ;;  %v59_v15 = vld [vmem:[#allocation3 + $0x40] sm:$0xff]  ;;  %v60_v16 = vld [vmem:[#allocation3 + $0x48] sm:$0xff]  ;;  %s3423_s28 = smov 40   ;;  %s3424_s29 = smov 48  }
  0x17   :  { %v3473_v3 = vadd.s32 8, %v3468_v1  ;;  %v72_v4 = vmul.u32 2, %v3470_v2  ;;  %v61_v17 = vld [vmem:[#allocation3 + $0x50] sm:$0xff]  ;;  %v62_v18 = vld [vmem:[#allocation3 + $0x58] sm:$0xff]  ;;  %v63_v19 = vld [vmem:[#allocation3 + $0x60] sm:$0xff]  ;;  %v447_v23 = vmul.u32 2, %v3468_v1 }
  0x18   :  { %v64_v20 = vld [vmem:[#allocation3 + $0x68] sm:$0xff]  ;;  %v65_v21 = vld [vmem:[#allocation3 + $0x70] sm:$0xff]  ;;  %v66_v22 = vld [vmem:[#allocation3 + $0x78] sm:$0xff]  ;;  %s3425_s30 = smov 16   ;;  %s3426_s4 = smov 56  }
  0x19   :  { %vm73_vm1 = vcmp.eq.s32.totalorder %v3468_v1, %v72_v4  ;;  %vm74_vm2 = vcmp.eq.s32.totalorder %v3473_v3, %v72_v4  ;;  %v79_v5 = vadd.s32 1, %v72_v4  ;;  %v479_v24 = vadd.s32 1, %v447_v23  ;;  %s3427_s5 = smov 24   ;;  %s3428_s6 = smov 32  }
  0x1a   :  { %vm3118_vm3 = vmpackc.low %vm74_vm2, %vm73_vm1  ;;  %vm455_vm7 = vcmp.eq.s32.totalorder %v3470_v2, %v447_v23 }
  0x1b   :  { %3119 = vmatprep.subr.msk.bf16.mxu0 %vm3118_vm3, %v3415_v7  ;;  %vm80_vm4 = vcmp.eq.s32.totalorder %v3468_v1, %v79_v5  ;;  %vm81_vm5 = vcmp.eq.s32.totalorder %v3473_v3, %v79_v5  ;;  %vm487_vm8 = vcmp.eq.s32.totalorder %v3470_v2, %v479_v24 }
  0x1c   :  { %3121 = vmatpush3.bf16.msk.msra.mxu0 %vm3118_vm3, %v3415_v7  ;;  %vm3122_vm6 = vmpackc.low %vm81_vm5, %vm80_vm4 }
  0x1d   :  { %3123 = vmatprep.subr.msk.bf16.mxu1 %vm3122_vm6, %v3415_v7 }
  0x1e   :  { %3125 = vmatpush3.bf16.msk.msra.mxu1 %vm3122_vm6, %v3415_v7 }
  0x1f   :  { %2953 = vmatmul.mubr.msk.f32.vlgmr.msra.gmra.mrb[0].mxu0 %vm86_vm0, %v52_v8 }
  0x20   :  { %2955 = vmatprep.mubr.msk.f32.mxu0 %vm86_vm0, %v53_v9 }
  0x21   :  { %2981 = vmatmul.mubr.msk.f32.vlgmr.msra.gmra.mrb[0].mxu1 %vm86_vm0, %v52_v8 }
  0x22   :  { %2983 = vmatprep.mubr.msk.f32.mxu1 %vm86_vm0, %v53_v9 }
  0x23   :  { %2956 = vmatmul.mubr.msk.f32.gmra.mrb[2].mxu0 %vm86_vm0, %v54_v10 }
  0x24   :  { %2958 = vmatprep.mubr.msk.f32.mxu0 %vm86_vm0, %v55_v11 }
  0x25   :  { %2984 = vmatmul.mubr.msk.f32.gmra.mrb[2].mxu1 %vm86_vm0, %v54_v10  ;;  %v441_v10 = vadd.s32 16, %v3468_v1 }
  0x26   :  { %2986 = vmatprep.mubr.msk.f32.mxu1 %vm86_vm0, %v55_v11 }
  0x27   :  { %2959 = vmatmul.mubr.msk.f32.gmra.mrb[4].mxu0 %vm86_vm0, %v56_v12 }
  0x28   :  { %2961 = vmatprep.mubr.msk.f32.mxu0 %vm86_vm0, %v57_v13 }
  0x29   :  { %2987 = vmatmul.mubr.msk.f32.gmra.mrb[4].mxu1 %vm86_vm0, %v56_v12 }
  0x2a   :  { %2989 = vmatprep.mubr.msk.f32.mxu1 %vm86_vm0, %v57_v13 }
  0x2b   :  { %2962 = vmatmul.mubr.msk.f32.gmra.mrb[6].mxu0 %vm86_vm0, %v58_v14 }
  0x2c   :  { %2964 = vmatprep.mubr.msk.f32.mxu0 %vm86_vm0, %v59_v15 }
  0x2d   :  { %2990 = vmatmul.mubr.msk.f32.gmra.mrb[6].mxu1 %vm86_vm0, %v58_v14 }
  0x2e   :  { %2992 = vmatprep.mubr.msk.f32.mxu1 %vm86_vm0, %v59_v15 }
  0x2f   :  { %2965 = vmatmul.mubr.msk.f32.gmra.mrb[8].mxu0 %vm86_vm0, %v60_v16 }
  0x30   :  { %2967 = vmatprep.mubr.msk.f32.mxu0 %vm86_vm0, %v61_v17 }
  0x31   :  { %2993 = vmatmul.mubr.msk.f32.gmra.mrb[8].mxu1 %vm86_vm0, %v60_v16  ;;  %v448_v16 = vmul.u32 2, %v3473_v3 }
  0x32   :  { %2995 = vmatprep.mubr.msk.f32.mxu1 %vm86_vm0, %v61_v17  ;;  %v442_v17 = vadd.s32 24, %v3468_v1 }
  0x33   :  { %2968 = vmatmul.mubr.msk.f32.gmra.mrb[10].mxu0 %vm86_vm0, %v62_v18  ;;  %vm456_vm9 = vcmp.eq.s32.totalorder %v3470_v2, %v448_v16 }
  0x34   :  { %2970 = vmatprep.mubr.msk.f32.mxu0 %vm86_vm0, %v63_v19 }
  0x35   :  { %2996 = vmatmul.mubr.msk.f32.gmra.mrb[10].mxu1 %vm86_vm0, %v62_v18 }
  0x36   :  { %2998 = vmatprep.mubr.msk.f32.mxu1 %vm86_vm0, %v63_v19 }
  0x37   :  { %2971 = vmatmul.mubr.msk.f32.gmra.mrb[12].mxu0 %vm86_vm0, %v64_v20 }
  0x38   :  { %2973 = vmatprep.mubr.msk.f32.mxu0 %vm86_vm0, %v65_v21 }
  0x39   :  { %2999 = vmatmul.mubr.msk.f32.gmra.mrb[12].mxu1 %vm86_vm0, %v64_v20  ;;  %v449_v20 = vmul.u32 2, %v441_v10 }
  0x3a   :  { %3001 = vmatprep.mubr.msk.f32.mxu1 %vm86_vm0, %v65_v21  ;;  %v443_v21 = vadd.s32 32, %v3468_v1 }
  0x3b   :  { %2974 = vmatmul.mubr.msk.f32.gmra.mrb[14].mxu0 %vm86_vm0, %v66_v22  ;;  %v481_v3 = vadd.s32 1, %v449_v20  ;;  %vm457_vm11 = vcmp.eq.s32.totalorder %v3470_v2, %v449_v20 }
  0x3c   :  { %3036 = vmatprep.mubr.msk.f32.mxu0 %vm455_vm7, %v3416_v25 }
  0x3d   :  { %3002 = vmatmul.mubr.msk.f32.gmra.mrb[14].mxu1 %vm86_vm0, %v66_v22  ;;  %vm489_vm12 = vcmp.eq.s32.totalorder %v3470_v2, %v481_v3 }
  0x3e   :  { %3080 = vmatprep.mubr.msk.f32.mxu1 %vm487_vm8, %v3416_v25  ;;  %vm33_vm8 = vcmask 80896  }
  0xf2   :  { %v2954_v26 = vpop.f32.mrb[0].mxu0 }
  0xf3   :  { %v201_v27 = vpop.f32.mrb[1].mxu0 }
  0xf4   :  { %v2982_v28 = vpop.f32.mrb[0].mxu1 }
  0xf5   :  { %v426_v29 = vmax.f32 %v2954_v26, %v2982_v28  ;;  %v346_v30 = vpop.f32.mrb[1].mxu1  ;;  %v480_v26 = vadd.s32 1, %v448_v16  ;;  %v444_v28 = vadd.s32 40, %v3468_v1 }
  0xf6   :  { %v425_v31 = vmax.f32 %v201_v27, %v346_v30  ;;  %v2957_v32 = vpop.f32.mrb[2].mxu0  ;;  %v450_v27 = vmul.u32 2, %v442_v17  ;;  %v451_v30 = vmul.u32 2, %v443_v21 }
  0xf7   :  { %v211_v33 = vpop.f32.mrb[3].mxu0  ;;  %vm488_vm10 = vcmp.eq.s32.totalorder %v3470_v2, %v480_v26 }
  0xf8   :  { %v3126_v34 = vpack.c.bf16 %v426_v29, %v425_v31  ;;  %v2985_v35 = vpop.f32.mrb[2].mxu1  ;;  %v445_v31 = vadd.s32 48, %v3468_v1  ;;  %vm458_vm13 = vcmp.eq.s32.totalorder %v3470_v2, %v450_v27  ;;  %vm459_vm15 = vcmp.eq.s32.totalorder %v3470_v2, %v451_v30 }
  0xf9   :  { %v428_v36 = vmax.f32 %v2957_v32, %v2985_v35  ;;  %v356_v37 = vpop.f32.mrb[3].mxu1  ;;  %v482_v32 = vadd.s32 1, %v450_v27  ;;  %v483_v35 = vadd.s32 1, %v451_v30 }
  0xfa   :  { %v427_v38 = vmax.f32 %v211_v33, %v356_v37  ;;  %3127 = vmatprep.subr.bf16.mxu0 %v3126_v34  ;;  %3159 = vmatprep.subr.bf16.mxu1 %v3126_v34  ;;  %v2960_v39 = vpop.f32.mrb[4].mxu0  ;;  %v452_v33 = vmul.u32 2, %v444_v28 }
  0xfb   :  { %3129 = vmatpush3.bf16.msra.mxu0 %v3126_v34  ;;  %3161 = vmatpush3.bf16.msra.mxu1 %v3126_v34  ;;  %v221_v40 = vpop.f32.mrb[5].mxu0  ;;  %v446_v34 = vadd.s32 56, %v3468_v1  ;;  %vm490_vm14 = vcmp.eq.s32.totalorder %v3470_v2, %v482_v32  ;;  %vm491_vm1 = vcmp.eq.s32.totalorder %v3470_v2, %v483_v35 }
  0xfc   :  { %v3130_v41 = vpack.c.bf16 %v428_v36, %v427_v38  ;;  %v2988_v42 = vpop.f32.mrb[4].mxu1  ;;  %v453_v36 = vmul.u32 2, %v445_v31  ;;  %v484_v37 = vadd.s32 1, %v452_v33  ;;  %vm460_vm2 = vcmp.eq.s32.totalorder %v3470_v2, %v452_v33 }
  0xfd   :  { %v430_v43 = vmax.f32 %v2960_v39, %v2988_v42  ;;  %v366_v44 = vpop.f32.mrb[5].mxu1  ;;  %v454_v38 = vmul.u32 2, %v446_v34 }
  0xfe   :  { %v429_v45 = vmax.f32 %v221_v40, %v366_v44  ;;  %3131 = vmatprep.subr.bf16.mxu0 %v3130_v41  ;;  %3163 = vmatprep.subr.bf16.mxu1 %v3130_v41  ;;  %v2963_v46 = vpop.f32.mrb[6].mxu0  ;;  %v485_v39 = vadd.s32 1, %v453_v36  ;;  %vm492_vm3 = vcmp.eq.s32.totalorder %v3470_v2, %v484_v37  ;;  %vm461_vm4 = vcmp.eq.s32.totalorder %v3470_v2, %v453_v36 }
  0xff   :  { %3133 = vmatpush3.bf16.msra.mxu0 %v3130_v41  ;;  %3165 = vmatpush3.bf16.msra.mxu1 %v3130_v41  ;;  %v231_v47 = vpop.f32.mrb[7].mxu0  ;;  %v486_v40 = vadd.s32 1, %v454_v38  ;;  %vm462_vm6 = vcmp.eq.s32.totalorder %v3470_v2, %v454_v38  ;;  %v4694_v41 = vmov 0.0  }
 0x100   :  { %v3134_v48 = vpack.c.bf16 %v430_v43, %v429_v45  ;;  %v2991_v49 = vpop.f32.mrb[6].mxu1  ;;  %vm493_vm5 = vcmp.eq.s32.totalorder %v3470_v2, %v485_v39  ;;  %37 = vst.msk [vmem:[#allocation2 + $0x10] sm:$0xff] %vm33_vm8, %v4694_v41  ;;  %34 = vst.msk [vmem:[#allocation2] sm:$0xff] %vm33_vm8, %v4694_v41 }
 0x101   :  { %v432_v50 = vmax.f32 %v2963_v46, %v2991_v49  ;;  %v376_v51 = vpop.f32.mrb[7].mxu1  ;;  %vm494_vm7 = vcmp.eq.s32.totalorder %v3470_v2, %v486_v40  ;;  %39 = vst.msk [vmem:[#allocation2 + $0x20] sm:$0xff] %vm33_vm8, %v4694_v41  ;;  %41 = vst.msk [vmem:[#allocation2 + $0x30] sm:$0xff] %vm33_vm8, %v4694_v41 }
 0x102   :  { %v431_v52 = vmax.f32 %v231_v47, %v376_v51  ;;  %3135 = vmatprep.subr.bf16.mxu0 %v3134_v48  ;;  %3167 = vmatprep.subr.bf16.mxu1 %v3134_v48  ;;  %v2966_v53 = vpop.f32.mrb[8].mxu0  ;;  %43 = vst.msk [vmem:[#allocation2 + $0x40] sm:$0xff] %vm33_vm8, %v4694_v41  ;;  %45 = vst.msk [vmem:[#allocation2 + $0x50] sm:$0xff] %vm33_vm8, %v4694_v41 }
 0x103   :  { %3137 = vmatpush3.bf16.msra.mxu0 %v3134_v48  ;;  %3169 = vmatpush3.bf16.msra.mxu1 %v3134_v48  ;;  %v241_v54 = vpop.f32.mrb[9].mxu0  ;;  %47 = vst.msk [vmem:[#allocation2 + $0x60] sm:$0xff] %vm33_vm8, %v4694_v41  ;;  %49 = vst.msk [vmem:[#allocation2 + $0x70] sm:$0xff] %vm33_vm8, %v4694_v41 }
 0x104   :  { %v3138_v55 = vpack.c.bf16 %v432_v50, %v431_v52  ;;  %v2994_v56 = vpop.f32.mrb[8].mxu1 }
 0x105   :  { %v434_v57 = vmax.f32 %v2966_v53, %v2994_v56  ;;  %v386_v58 = vpop.f32.mrb[9].mxu1 }
 0x106   :  { %v433_v59 = vmax.f32 %v241_v54, %v386_v58  ;;  %3139 = vmatprep.subr.bf16.mxu0 %v3138_v55  ;;  %3171 = vmatprep.subr.bf16.mxu1 %v3138_v55  ;;  %v2969_v60 = vpop.f32.mrb[10].mxu0 }
 0x107   :  { %3141 = vmatpush3.bf16.msra.mxu0 %v3138_v55  ;;  %3173 = vmatpush3.bf16.msra.mxu1 %v3138_v55  ;;  %v251_v61 = vpop.f32.mrb[11].mxu0 }
 0x108   :  { %v3142_v62 = vpack.c.bf16 %v434_v57, %v433_v59  ;;  %v2997_v63 = vpop.f32.mrb[10].mxu1 }
 0x109   :  { %v436_v0 = vmax.f32 %v2969_v60, %v2997_v63  ;;  %v396_v4 = vpop.f32.mrb[11].mxu1 }
 0x10a   :  { %v435_v5 = vmax.f32 %v251_v61, %v396_v4  ;;  %3143 = vmatprep.subr.bf16.mxu0 %v3142_v62  ;;  %3175 = vmatprep.subr.bf16.mxu1 %v3142_v62  ;;  %v2972_v6 = vpop.f32.mrb[12].mxu0 }
 0x10b   :  { %3145 = vmatpush3.bf16.msra.mxu0 %v3142_v62  ;;  %3177 = vmatpush3.bf16.msra.mxu1 %v3142_v62  ;;  %v261_v7 = vpop.f32.mrb[13].mxu0 }
 0x10c   :  { %v3146_v8 = vpack.c.bf16 %v436_v0, %v435_v5  ;;  %v3000_v9 = vpop.f32.mrb[12].mxu1 }
 0x10d   :  { %v438_v11 = vmax.f32 %v2972_v6, %v3000_v9  ;;  %v406_v12 = vpop.f32.mrb[13].mxu1 }
 0x10e   :  { %v437_v13 = vmax.f32 %v261_v7, %v406_v12  ;;  %3147 = vmatprep.subr.bf16.mxu0 %v3146_v8  ;;  %3179 = vmatprep.subr.bf16.mxu1 %v3146_v8  ;;  %v2975_v14 = vpop.f32.mrb[14].mxu0 }
 0x10f   :  { %3149 = vmatpush3.bf16.msra.mxu0 %v3146_v8  ;;  %3181 = vmatpush3.bf16.msra.mxu1 %v3146_v8  ;;  %v271_v15 = vpop.f32.mrb[15].mxu0 }
 0x110   :  { %v3150_v18 = vpack.c.bf16 %v438_v11, %v437_v13  ;;  %v3003_v19 = vpop.f32.mrb[14].mxu1 }
 0x111   :  { %v440_v22 = vmax.f32 %v2975_v14, %v3003_v19  ;;  %v416_v23 = vpop.f32.mrb[15].mxu1 }
 0x112   :  { %v439_v24 = vmax.f32 %v271_v15, %v416_v23  ;;  %3151 = vmatprep.subr.bf16.mxu0 %v3150_v18  ;;  %3183 = vmatprep.subr.bf16.mxu1 %v3150_v18 }
 0x113   :  { %3153 = vmatpush3.bf16.msra.mxu0 %v3150_v18  ;;  %3185 = vmatpush3.bf16.msra.mxu1 %v3150_v18  ;;  %v3420_v18 = vmov 1983009808  }
 0x114   :  { %v3154_v29 = vpack.c.bf16 %v440_v22, %v439_v24  ;;  %v905_v19 = vunpack.c.l.s4 %v3420_v18 }
 0x116   :  { %3155 = vmatprep.subr.bf16.mxu0 %v3154_v29  ;;  %3187 = vmatprep.subr.bf16.mxu1 %v3154_v29 }
 0x117   :  { %3157 = vmatpush3.bf16.msra.mxu0 %v3154_v29  ;;  %3189 = vmatpush3.bf16.msra.mxu1 %v3154_v29 }
 0x11a   :  { %3037 = vmatmul.mubr.msk.f32.vlgmr.msra.gmra.mrb[16].mxu0 %vm456_vm9, %v3416_v25  ;;  %3081 = vmatmul.mubr.msk.f32.vlgmr.msra.gmra.mrb[16].mxu1 %vm488_vm10, %v3416_v25  ;;  %vm35_vm9 = vcmask 74752   ;;  %vm761_vm10 = vcmask 72712  }
 0x11b   :  { %3039 = vmatprep.mubr.msk.f32.mxu0 %vm457_vm11, %v3416_v25  ;;  %3083 = vmatprep.mubr.msk.f32.mxu1 %vm489_vm12, %v3416_v25  ;;  %38 = vst.msk [vmem:[#allocation2 + $0x18] sm:$0x3] %vm35_vm9, %v4694_v41  ;;  %36 = vst.msk [vmem:[#allocation2 + $0x8] sm:$0x3] %vm35_vm9, %v4694_v41  ;;  %vm820_vm11 = vcmask 1046528   ;;  %vm861_vm12 = vcmask 1045504  }
 0x11c   :  { %40 = vst.msk [vmem:[#allocation2 + $0x28] sm:$0x3] %vm35_vm9, %v4694_v41  ;;  %42 = vst.msk [vmem:[#allocation2 + $0x38] sm:$0x3] %vm35_vm9, %v4694_v41 }
 0x11d   :  { %44 = vst.msk [vmem:[#allocation2 + $0x48] sm:$0x3] %vm35_vm9, %v4694_v41  ;;  %46 = vst.msk [vmem:[#allocation2 + $0x58] sm:$0x3] %vm35_vm9, %v4694_v41 }
 0x11e   :  { %3040 = vmatmul.mubr.msk.f32.gmra.mrb[18].mxu0 %vm458_vm13, %v3416_v25  ;;  %3084 = vmatmul.mubr.msk.f32.gmra.mrb[18].mxu1 %vm490_vm14, %v3416_v25  ;;  %48 = vst.msk [vmem:[#allocation2 + $0x68] sm:$0x3] %vm35_vm9, %v4694_v41  ;;  %50 = vst.msk [vmem:[#allocation2 + $0x78] sm:$0x3] %vm35_vm9, %v4694_v41  ;;  %vm3430_vm13 = vmmov 0   ;;  %vm1654_vm14 = vcmask 64512  }
 0x11f   :  { %3042 = vmatprep.mubr.msk.f32.mxu0 %vm459_vm15, %v3416_v25  ;;  %3086 = vmatprep.mubr.msk.f32.mxu1 %vm491_vm1, %v3416_v25  ;;  %vm1665_vm15 = vcmask 195584   ;;  %vm1671_vm1 = vcmask 261120  }
 0x122   :  { %3043 = vmatmul.mubr.msk.f32.gmra.mrb[20].mxu0 %vm460_vm2, %v3416_v25  ;;  %3087 = vmatmul.mubr.msk.f32.gmra.mrb[20].mxu1 %vm492_vm3, %v3416_v25  ;;  %vm1677_vm2 = vcmask 326656   ;;  %vm1683_vm3 = vcmask 392192  }
 0x123   :  { %3045 = vmatprep.mubr.msk.f32.mxu0 %vm461_vm4, %v3416_v25  ;;  %3089 = vmatprep.mubr.msk.f32.mxu1 %vm493_vm5, %v3416_v25  ;;  %vm1689_vm4 = vcmask 457728   ;;  %vm1704_vm5 = vcmask 1043456  }
 0x126   :  { %3046 = vmatmul.mubr.msk.f32.gmra.mrb[22].mxu0 %vm462_vm6, %v3416_v25  ;;  %3090 = vmatmul.mubr.msk.f32.gmra.mrb[22].mxu1 %vm494_vm7, %v3416_v25  ;;  %vm1700_vm6 = vcmask 293888   ;;  %vm2756_vm7 = vcmask 523264  }
 0x1ed   :  { %v3038_v2 = vpop.f32.mrb[16].mxu0  ;;  %v3082_v25 = vpop.f32.mrb[16].mxu1 }
 0x1ee   :  { %v722_v42 = vmax.f32 %v3038_v2, %v3082_v25  ;;  %v577_v43 = vpop.f32.mrb[17].mxu0  ;;  %v682_v44 = vpop.f32.mrb[17].mxu1 }
 0x1ef   :  { %v721_v45 = vmax.f32 %v577_v43, %v682_v44 }
 0x1f0   :  { %739 = vrot.lane.b32.xlu0 %v722_v42, %s3418_s0 }
 0x1f1   :  { %v3041_v46 = vpop.f32.mrb[18].mxu0  ;;  %v3085_v47 = vpop.f32.mrb[18].mxu1 }
 0x1f2   :  { %v724_v48 = vmax.f32 %v3041_v46, %v3085_v47  ;;  %v587_v49 = vpop.f32.mrb[19].mxu0  ;;  %v692_v50 = vpop.f32.mrb[19].mxu1  ;;  %v906_v46 = vunpack.c.0.s8 %v905_v19 }
 0x1f3   :  { %v723_v51 = vmax.f32 %v587_v49, %v692_v50 }
 0x1f4   :  { %737 = vrot.lane.b32.xlu0 %v721_v45, %s3418_s0  ;;  %743 = vrot.lane.b32.xlu1 %v724_v48, %s3418_s0 }
 0x1f5   :  { %v3044_v52 = vpop.f32.mrb[20].mxu0  ;;  %v3088_v53 = vpop.f32.mrb[20].mxu1 }
 0x1f6   :  { %v726_v54 = vmax.f32 %v3044_v52, %v3088_v53  ;;  %v597_v55 = vpop.f32.mrb[21].mxu0  ;;  %v702_v56 = vpop.f32.mrb[21].mxu1 }
 0x1f7   :  { %v725_v57 = vmax.f32 %v597_v55, %v702_v56 }
 0x1f8   :  { %741 = vrot.lane.b32.xlu1 %v723_v51, %s3418_s0 }
 0x1f9   :  { %v3091_v58 = vpop.f32.mrb[22].mxu1  ;;  %745 = vrot.lane.b32.xlu0 %v725_v57, %s3418_s0  ;;  %v3047_v59 = vpop.f32.mrb[22].mxu0 }
 0x1fa   :  { %v728_v60 = vmax.f32 %v3047_v59, %v3091_v58  ;;  %v607_v61 = vpop.f32.mrb[23].mxu0  ;;  %v712_v62 = vpop.f32.mrb[23].mxu1 }
 0x1fb   :  { %v727_v63 = vmax.f32 %v607_v61, %v712_v62 }
 0x1fc   :  { %747 = vrot.lane.b32.xlu1 %v726_v54, %s3418_s0 }
 0x1fd   :  { %749 = vrot.lane.b32.xlu0 %v727_v63, %s3418_s0 }
 0x200   :  { %751 = vrot.lane.b32.xlu1 %v728_v60, %s3418_s0 }
 0x262   :  { %v740_v0 = vpop.permute.xlu0 %739 }
 0x263   :  { %763 = vst.msk [vmem:[#allocation2 + $0x11] sm:$0xff] %vm761_vm10, %v740_v0 }
 0x266   :  { %v738_v4 = vpop.permute.xlu0 %737  ;;  %v744_v5 = vpop.permute.xlu1 %743 }
 0x267   :  { %762 = vst.msk [vmem:[#allocation2 + $0x1] sm:$0xff] %vm761_vm10, %v738_v4  ;;  %765 = vst.msk [vmem:[#allocation2 + $0x31] sm:$0xff] %vm761_vm10, %v744_v5  ;;  %v3671_v5 = vsub.s32 %v906_v46, %v3468_v1 }
 0x26a   :  { %v742_v6 = vpop.permute.xlu1 %741  ;;  %v3587_v7 = vld [vmem:[#allocation2 + $0x10] sm:$0xff]  ;;  %v773_v8 = vld [vmem:[#allocation2 + $0x18] sm:$0x3] }
 0x26b   :  { %764 = vst.msk [vmem:[#allocation2 + $0x21] sm:$0xff] %vm761_vm10, %v742_v6  ;;  %794 = vrot.lane.b32.xlu1 %v3587_v7, %s3419_s26  ;;  %v824_v9 = vrot.slane %v3587_v7, 1  ;;  %v825_v10 = vrot.slane %v773_v8, 1  ;;  %v865_v11 = vrot.slane %v3587_v7, 2  ;;  %v866_v12 = vrot.slane %v773_v8, 2  ;;  %v746_v13 = vpop.permute.xlu0 %745 }
 0x26c   :  { %766 = vst.msk [vmem:[#allocation2 + $0x41] sm:$0xff] %vm761_vm10, %v746_v13 }
 0x26d   :  { %v3604_v20 = vsel %vm820_vm11, %v824_v9, %v825_v10  ;;  %v3607_v21 = vsel %vm861_vm12, %v865_v11, %v866_v12 }
 0x26e   :  { %v3595_v14 = vld [vmem:[#allocation2] sm:$0xff]  ;;  %v771_v15 = vld [vmem:[#allocation2 + $0x8] sm:$0x3]  ;;  %v3597_v16 = vld [vmem:[#allocation2 + $0x30] sm:$0xff]  ;;  %v748_v17 = vpop.permute.xlu1 %747 }
 0x26f   :  { %806 = vrot.lane.b32.xlu1 %v3587_v7, %s3421_s27  ;;  %792 = vrot.lane.b32.xlu0 %v3595_v14, %s3419_s26  ;;  %v777_v22 = vld [vmem:[#allocation2 + $0x38] sm:$0x3]  ;;  %767 = vst.msk [vmem:[#allocation2 + $0x51] sm:$0xff] %vm761_vm10, %v748_v17  ;;  %v750_v23 = vpop.permute.xlu0 %749  ;;  %v830_v24 = vrot.slane %v3597_v16, 1  ;;  %v871_v27 = vrot.slane %v3597_v16, 2  ;;  %v821_v29 = vrot.slane %v3595_v14, 1  ;;  %v919_v30 = vcombine.high %v3587_v7, %v3597_v16 }
 0x270   :  { %v831_v26 = vrot.slane %v777_v22, 1  ;;  %v872_v28 = vrot.slane %v777_v22, 2  ;;  %768 = vst.msk [vmem:[#allocation2 + $0x61] sm:$0xff] %vm761_vm10, %v750_v23  ;;  %v822_v3 = vrot.slane %v771_v15, 1  ;;  %v918_v31 = vcombine.low %v3587_v7, %v3597_v16 }
 0x271   :  { %v862_v32 = vrot.slane %v3595_v14, 2  ;;  %v863_v33 = vrot.slane %v771_v15, 2 }
 0x272   :  { %v3619_v34 = vld [vmem:[#allocation2 + $0x20] sm:$0xff]  ;;  %v3622_v35 = vsel %vm820_vm11, %v830_v24, %v831_v26  ;;  %v775_v36 = vld [vmem:[#allocation2 + $0x28] sm:$0x3]  ;;  %v3625_v37 = vsel %vm861_vm12, %v871_v27, %v872_v28  ;;  %v752_v38 = vpop.permute.xlu1 %751  ;;  %v823_v47 = vsel %vm820_vm11, %v821_v29, %v822_v3 }
 0x273   :  { %839 = vrot.lane.b32.xlu1 %v3604_v20, %s3419_s26  ;;  %804 = vrot.lane.b32.xlu0 %v3595_v14, %s3421_s27  ;;  %v1086_v39 = vcombine.low %v3604_v20, %v3622_v35  ;;  %v1087_v40 = vcombine.high %v3604_v20, %v3622_v35  ;;  %v827_v2 = vrot.slane %v3619_v34, 1  ;;  %v828_v25 = vrot.slane %v775_v36, 1  ;;  %769 = vst.msk [vmem:[#allocation2 + $0x71] sm:$0xff] %vm761_vm10, %v752_v38  ;;  %v3646_v49 = vld [vmem:[#allocation2 + $0x40] sm:$0xff]  ;;  %v779_v55 = vld [vmem:[#allocation2 + $0x48] sm:$0x3] }
 0x274   :  { %v1326_v42 = vcombine.low %v3607_v21, %v3625_v37  ;;  %v1327_v43 = vcombine.high %v3607_v21, %v3625_v37  ;;  %v868_v44 = vrot.slane %v3619_v34, 2  ;;  %v869_v45 = vrot.slane %v775_v36, 2 }
 0x275   :  { %v3644_v48 = vsel %vm820_vm11, %v827_v2, %v828_v25  ;;  %v3649_v50 = vsel %vm861_vm12, %v862_v32, %v863_v33  ;;  %v1813_v61 = vrot.slane %v3646_v49, 1  ;;  %v1814_v0 = vrot.slane %v779_v55, 1 }
 0x276   :  { %v1070_v51 = vcombine.low %v823_v47, %v3644_v48  ;;  %v1071_v52 = vcombine.high %v823_v47, %v3644_v48  ;;  %v3654_v53 = vsel %vm861_vm12, %v868_v44, %v869_v45  ;;  %v781_v54 = vld [vmem:[#allocation2 + $0x58] sm:$0x3]  ;;  %v3665_v60 = vld [vmem:[#allocation2 + $0x50] sm:$0xff]  ;;  %v1853_v12 = vrot.slane %v3646_v49, 2 }
 0x277   :  { %851 = vrot.lane.b32.xlu1 %v3604_v20, %s3421_s27  ;;  %837 = vrot.lane.b32.xlu0 %v823_v47, %s3419_s26  ;;  %v1310_v56 = vcombine.low %v3649_v50, %v3654_v53  ;;  %v1311_v57 = vcombine.high %v3649_v50, %v3654_v53  ;;  %v3663_v58 = vld [vmem:[#allocation2 + $0x60] sm:$0xff]  ;;  %v783_v59 = vld [vmem:[#allocation2 + $0x68] sm:$0x3]  ;;  %v1816_v62 = vrot.slane %v3665_v60, 1  ;;  %v1817_v63 = vrot.slane %v781_v54, 1 }
 0x278   :  { %v1856_v4 = vrot.slane %v3665_v60, 2  ;;  %v1857_v6 = vrot.slane %v781_v54, 2  ;;  %v1819_v10 = vrot.slane %v3663_v58, 1  ;;  %v1820_v11 = vrot.slane %v783_v59, 1 }
 0x279   :  { %v1854_v13 = vrot.slane %v779_v55, 2  ;;  %v3682_v18 = vrot.slane %v1087_v40, %v3671_v5  ;;  %v903_v19 = vcombine.high %v3595_v14, %v3619_v34  ;;  %v3687_v22 = vrot.slane %v1071_v52, %v3671_v5 }
 0x27a   :  { %v3673_v8 = vld [vmem:[#allocation2 + $0x70] sm:$0xff]  ;;  %v785_v9 = vld [vmem:[#allocation2 + $0x78] sm:$0x3]  ;;  %v3690_v23 = vrot.slane %v1327_v43, %v3671_v5  ;;  %v3693_v24 = vsel %vm820_vm11, %v1813_v61, %v1814_v0  ;;  %v3696_v26 = vsel %vm820_vm11, %v1819_v10, %v1820_v11  ;;  %v3699_v27 = vsel %vm820_vm11, %v1816_v62, %v1817_v63 }
 0x27b   :  { %880 = vrot.lane.b32.xlu1 %v3607_v21, %s3419_s26  ;;  %849 = vrot.lane.b32.xlu0 %v823_v47, %s3421_s27  ;;  %v1822_v15 = vrot.slane %v3673_v8, 1  ;;  %v1823_v17 = vrot.slane %v785_v9, 1  ;;  %v1862_v29 = vrot.slane %v3673_v8, 2  ;;  %v1863_v3 = vrot.slane %v785_v9, 2 }
 0x27c   :  { %v3710_v32 = vrot.slane %v1311_v57, %v3671_v5  ;;  %v3713_v33 = vsel %vm861_vm12, %v1856_v4, %v1857_v6  ;;  %v3716_v36 = vsel %vm861_vm12, %v1853_v12, %v1854_v13  ;;  %v1859_v38 = vrot.slane %v3663_v58, 2 }
 0x27d   :  { %v3702_v28 = vsel %vm820_vm11, %v1822_v15, %v1823_v17  ;;  %v2061_v40 = vcombine.low %v3693_v24, %v3696_v26  ;;  %v1860_v2 = vrot.slane %v783_v59, 2  ;;  %v3722_v25 = vrot.slane %v903_v19, %v3671_v5 }
 0x27e   :  { %v3728_v43 = vrot.slane %v919_v30, %v3671_v5  ;;  %v2078_v44 = vcombine.high %v3699_v27, %v3702_v28  ;;  %v2062_v45 = vcombine.high %v3693_v24, %v3696_v26  ;;  %v1150_v46 = vcombine.low %v3687_v22, %v3682_v18 }
 0x27f   :  { %892 = vrot.lane.b32.xlu1 %v3607_v21, %s3421_s27  ;;  %878 = vrot.lane.b32.xlu0 %v3649_v50, %s3419_s26  ;;  %v902_v47 = vcombine.low %v3595_v14, %v3619_v34  ;;  %v3739_v52 = vsel %vm861_vm12, %v1862_v29, %v1863_v3  ;;  %v3744_v30 = vrot.slane %v1070_v51, %v3671_v5 }
 0x280   :  { %v982_v54 = vcombine.low %v3722_v25, %v3728_v43  ;;  %v3750_v55 = vrot.slane %v1086_v39, %v3671_v5  ;;  %v3763_v51 = vrot.slane %v918_v31, %v3671_v5  ;;  %v983_v20 = vcombine.high %v3722_v25, %v3728_v43 }
 0x281   :  { %v3757_v14 = vrot.slane %v902_v47, %v3671_v5  ;;  %v3768_v39 = vsel %vm861_vm12, %v1859_v38, %v1860_v2  ;;  %v1151_v59 = vcombine.high %v3687_v22, %v3682_v18  ;;  %v2077_v7 = vcombine.low %v3699_v27, %v3702_v28 }
 0x282   :  { %v1134_v57 = vcombine.low %v3744_v30, %v3750_v55  ;;  %v1135_v61 = vcombine.high %v3744_v30, %v3750_v55  ;;  %v3785_v0 = vrot.slane %v2062_v45, %v3671_v5  ;;  %v2317_v4 = vcombine.low %v3713_v33, %v3739_v52 }
 0x283   :  { %798 = vrot.lane.b32.xlu1 %v3597_v16, %s3419_s26  ;;  %890 = vrot.lane.b32.xlu0 %v3649_v50, %s3421_s27  ;;  %v966_v31 = vcombine.low %v3757_v14, %v3763_v51  ;;  %v3793_v6 = vrot.slane %v1310_v56, %v3671_v5  ;;  %v3800_v9 = vrot.slane %v2078_v44, %v3671_v5 }
 0x284   :  { %4718 = vst [vmem:[#allocation9_spill] sm:$0xff] %v3785_v0  ;;  %v2318_v10 = vcombine.high %v3713_v33, %v3739_v52  ;;  %v2302_v11 = vcombine.high %v3716_v36, %v3768_v39  ;;  %v3810_v50 = vrot.slane %v1326_v42, %v3671_v5  ;;  %v1893_v56 = vcombine.low %v3646_v49, %v3663_v58 }
 0x285   :  { %4719 = vst [vmem:[#allocation10_spill] sm:$0xff] %v3800_v9  ;;  %v1909_v12 = vcombine.low %v3665_v60, %v3673_v8  ;;  %v3819_v13 = vrot.slane %v2061_v40, %v3671_v5  ;;  %v3822_v15 = vrot.slane %v2077_v7, %v3671_v5  ;;  %v1894_v21 = vcombine.high %v3646_v49, %v3663_v58 }
 0x286   :  { %v1910_v42 = vcombine.high %v3665_v60, %v3673_v8  ;;  %v2301_v17 = vcombine.low %v3716_v36, %v3768_v39  ;;  %v3835_v3 = vrot.slane %v1893_v56, %v3671_v5  ;;  %v3855_v47 = vrot.slane %v2318_v10, %v3671_v5 }
 0x287   :  { %810 = vrot.lane.b32.xlu1 %v3597_v16, %s3421_s27  ;;  %796 = vrot.lane.b32.xlu0 %v3619_v34, %s3419_s26  ;;  %v3842_v38 = vrot.slane %v1909_v12, %v3671_v5  ;;  %v3849_v44 = vrot.slane %v1894_v21, %v3671_v5  ;;  %v3872_v10 = vrot.slane %v2317_v4, %v3671_v5 }
 0x288   :  { %v3852_v45 = vrot.slane %v1910_v42, %v3671_v5  ;;  %4720 = vst [vmem:[#allocation11_spill] sm:$0xff] %v3855_v47  ;;  %v3869_v42 = vrot.slane %v2301_v17, %v3671_v5  ;;  %v4726_v22 = vcombine.high %v3757_v14, %v3763_v51 }
 0x289   :  { %4723 = vst [vmem:[#allocation14_spill] sm:$0xff] %v3872_v10 }
 0x28a   :  { %4722 = vst [vmem:[#allocation13_spill] sm:$0xff] %v3869_v42 }
 0x28b   :  { %843 = vrot.lane.b32.xlu1 %v3622_v35, %s3419_s26  ;;  %808 = vrot.lane.b32.xlu0 %v3619_v34, %s3421_s27  ;;  %v3858_v34 = vrot.slane %v2302_v11, %v3671_v5 }
 0x28d   :  { %4721 = vst [vmem:[#allocation12_spill] sm:$0xff] %v3858_v34 }
 0x28f   :  { %855 = vrot.lane.b32.xlu1 %v3622_v35, %s3421_s27  ;;  %841 = vrot.lane.b32.xlu0 %v3644_v48, %s3419_s26 }
 0x293   :  { %884 = vrot.lane.b32.xlu1 %v3625_v37, %s3419_s26  ;;  %853 = vrot.lane.b32.xlu0 %v3644_v48, %s3421_s27 }
 0x297   :  { %896 = vrot.lane.b32.xlu1 %v3625_v37, %s3421_s27  ;;  %882 = vrot.lane.b32.xlu0 %v3654_v53, %s3419_s26 }
 0x29b   :  { %1787 = vrot.lane.b32.xlu1 %v3665_v60, %s3419_s26  ;;  %894 = vrot.lane.b32.xlu0 %v3654_v53, %s3421_s27 }
 0x29f   :  { %1799 = vrot.lane.b32.xlu1 %v3665_v60, %s3421_s27  ;;  %1785 = vrot.lane.b32.xlu0 %v3646_v49, %s3419_s26 }
 0x2a3   :  { %1831 = vrot.lane.b32.xlu1 %v3699_v27, %s3419_s26  ;;  %1797 = vrot.lane.b32.xlu0 %v3646_v49, %s3421_s27 }
 0x2a7   :  { %1843 = vrot.lane.b32.xlu1 %v3699_v27, %s3421_s27  ;;  %1829 = vrot.lane.b32.xlu0 %v3693_v24, %s3419_s26 }
 0x2ab   :  { %1871 = vrot.lane.b32.xlu1 %v3713_v33, %s3419_s26  ;;  %1841 = vrot.lane.b32.xlu0 %v3693_v24, %s3421_s27 }
 0x2af   :  { %1883 = vrot.lane.b32.xlu1 %v3713_v33, %s3421_s27  ;;  %1869 = vrot.lane.b32.xlu0 %v3716_v36, %s3419_s26 }
 0x2b3   :  { %1791 = vrot.lane.b32.xlu1 %v3673_v8, %s3419_s26  ;;  %1881 = vrot.lane.b32.xlu0 %v3716_v36, %s3421_s27 }
 0x2b7   :  { %1803 = vrot.lane.b32.xlu1 %v3673_v8, %s3421_s27  ;;  %1789 = vrot.lane.b32.xlu0 %v3663_v58, %s3419_s26 }
 0x2bb   :  { %1835 = vrot.lane.b32.xlu1 %v3702_v28, %s3419_s26  ;;  %1801 = vrot.lane.b32.xlu0 %v3663_v58, %s3421_s27 }
 0x2bf   :  { %1847 = vrot.lane.b32.xlu1 %v3702_v28, %s3421_s27  ;;  %1833 = vrot.lane.b32.xlu0 %v3696_v26, %s3419_s26 }
 0x2c3   :  { %1875 = vrot.lane.b32.xlu1 %v3739_v52, %s3419_s26  ;;  %1845 = vrot.lane.b32.xlu0 %v3696_v26, %s3421_s27 }
 0x2c7   :  { %1887 = vrot.lane.b32.xlu1 %v3739_v52, %s3421_s27  ;;  %1873 = vrot.lane.b32.xlu0 %v3768_v39, %s3419_s26  ;;  %v3422_v52 = vmov 1934713408  }
 0x2cb   :  { %1885 = vrot.lane.b32.xlu0 %v3768_v39, %s3421_s27  ;;  %v969_v39 = vunpack.c.l.s4 %v3422_v52 }
 0x2cd   :  { %v970_v21 = vunpack.c.0.s8 %v969_v39 }
 0x2cf   :  { %v3967_v40 = vsub.s32 %v970_v21, %v3468_v1 }
 0x2d1   :  { %v3979_v1 = vrot.slane %v982_v54, %v3967_v40  ;;  %v3997_v54 = vrot.slane %v1134_v57, %v3967_v40  ;;  %v4009_v25 = vrot.slane %v1135_v61, %v3967_v40  ;;  %v4019_v18 = vrot.slane %v966_v31, %v3967_v40 }
 0x2d2   :  { %v4025_v30 = vrot.slane %v4726_v22, %v3967_v40 }
 0x2d3   :  { %4724 = vst [vmem:[#allocation15_spill] sm:$0xff] %v3997_v54  ;;  %4725 = vst [vmem:[#allocation16_spill] sm:$0xff] %v4019_v18 }
 0x2dd   :  { %v795_v37 = vpop.permute.xlu1 %794 }
 0x2e1   :  { %v807_v48 = vpop.permute.xlu1 %806  ;;  %v793_v49 = vpop.permute.xlu0 %792 }
 0x2e5   :  { %v3948_v53 = vpop.permute.xlu1 %839  ;;  %v805_v58 = vpop.permute.xlu0 %804 }
 0x2e9   :  { %v3950_v60 = vpop.permute.xlu1 %851  ;;  %v3952_v8 = vpop.permute.xlu0 %837 }
 0x2ed   :  { %v3954_v24 = vpop.permute.xlu1 %880  ;;  %v3956_v26 = vpop.permute.xlu0 %849 }
 0x2f1   :  { %v3958_v27 = vpop.permute.xlu1 %892  ;;  %v3960_v28 = vpop.permute.xlu0 %878 }
 0x2f5   :  { %v799_v33 = vpop.permute.xlu1 %798  ;;  %v3962_v36 = vpop.permute.xlu0 %890 }
 0x2f6   :  { %v950_v41 = vcombine.low %v795_v37, %v799_v33  ;;  %v951_v12 = vcombine.high %v795_v37, %v799_v33 }
 0x2f8   :  { %v958_v52 = vrot.slane %v950_v41, %v3671_v5  ;;  %v965_v39 = vrot.slane %v951_v12, %v3671_v5  ;;  %v3985_v41 = vrot.slane %v1150_v46, %v3967_v40  ;;  %v4003_v46 = vrot.slane %v1151_v59, %v3967_v40 }
 0x2f9   :  { %v811_v35 = vpop.permute.xlu1 %810  ;;  %v797_v4 = vpop.permute.xlu0 %796 }
 0x2fa   :  { %v934_v17 = vcombine.low %v793_v49, %v797_v4  ;;  %v935_v11 = vcombine.high %v793_v49, %v797_v4  ;;  %v1055_v56 = vcombine.high %v807_v48, %v811_v35  ;;  %v1054_v62 = vcombine.low %v807_v48, %v811_v35 }
 0x2fc   :  { %v942_v16 = vrot.slane %v934_v17, %v3671_v5  ;;  %v949_v29 = vrot.slane %v935_v11, %v3671_v5  ;;  %v1069_v4 = vrot.slane %v1055_v56, %v3671_v5  ;;  %v1062_v55 = vrot.slane %v1054_v62, %v3671_v5 }
 0x2fd   :  { %v3964_v2 = vpop.permute.xlu1 %843  ;;  %v809_v7 = vpop.permute.xlu0 %808 }
 0x2fe   :  { %v1039_v19 = vcombine.high %v805_v58, %v809_v7  ;;  %v1038_v49 = vcombine.low %v805_v58, %v809_v7  ;;  %v999_v7 = vcombine.high %v942_v16, %v958_v52  ;;  %v1014_v56 = vcombine.low %v949_v29, %v965_v39 }
 0x2ff   :  { %v998_v21 = vcombine.low %v942_v16, %v958_v52  ;;  %v1015_v11 = vcombine.high %v949_v29, %v965_v39  ;;  %v1190_v59 = vcombine.low %v3948_v53, %v3964_v2  ;;  %v4727_v29 = vcombine.high %v3710_v32, %v3690_v23 }
 0x300   :  { %v1053_v37 = vrot.slane %v1039_v19, %v3671_v5  ;;  %v3991_v19 = vrot.slane %v983_v20, %v3967_v40  ;;  %v1046_v43 = vrot.slane %v1038_v49, %v3671_v5  ;;  %v4038_v31 = vrot.slane %v999_v7, %v3967_v40 }
 0x301   :  { %v856_v33 = vpop.permute.xlu1 %855  ;;  %v842_v63 = vpop.permute.xlu0 %841  ;;  %v4035_v17 = vrot.slane %v4727_v29, %v3967_v40  ;;  %v4041_v14 = vrot.slane %v1014_v56, %v3967_v40  ;;  %v1191_v51 = vcombine.high %v3948_v53, %v3964_v2  ;;  %v1029_v35 = vrot.slane %v1015_v11, %v3967_v40 }
 0x302   :  { %v1118_v12 = vcombine.low %v1053_v37, %v1069_v4  ;;  %v1174_v61 = vcombine.low %v3952_v8, %v842_v63  ;;  %v1175_v62 = vcombine.high %v3952_v8, %v842_v63  ;;  %v4050_v52 = vrot.slane %v998_v21, %v3967_v40 }
 0x303   :  { %v1102_v39 = vcombine.low %v1046_v43, %v1062_v55  ;;  %v1222_v49 = vcombine.low %v3950_v60, %v856_v33  ;;  %v1223_v7 = vcombine.high %v3950_v60, %v856_v33  ;;  %v1103_v2 = vcombine.high %v1046_v43, %v1062_v55 }
 0x304   :  { %v4013_v20 = vrot.slane %v1118_v12, %v3967_v40  ;;  %4728 = vst [vmem:[#allocation17_spill] sm:$0xff] %v4050_v52  ;;  %v1119_v53 = vcombine.high %v1053_v37, %v1069_v4  ;;  %v4059_v8 = vrot.slane %v1174_v61, %v3671_v5  ;;  %v4063_v21 = vrot.slane %v1175_v62, %v3671_v5 }
 0x305   :  { %v885_v57 = vpop.permute.xlu1 %884  ;;  %v854_v16 = vpop.permute.xlu0 %853  ;;  %v1035_v33 = vcombine.high %v3979_v1, %v4041_v14  ;;  %v4080_v55 = vrot.slane %v1190_v59, %v3671_v5  ;;  %v1117_v62 = vrot.slane %v1103_v2, %v3967_v40  ;;  %v1037_v34 = vcombine.high %v3991_v19, %v1029_v35 }
 0x306   :  { %v1359_v48 = vcombine.high %v3954_v24, %v885_v57  ;;  %v1207_v58 = vcombine.high %v3956_v26, %v854_v16  ;;  %v1171_v63 = vcombine.high %v4013_v20, %v3985_v41  ;;  %v1358_v22 = vcombine.low %v3954_v24, %v885_v57 }
 0x307   :  { %v1206_v60 = vcombine.low %v3956_v26, %v854_v16  ;;  %v4083_v24 = vrot.slane %v1191_v51, %v3671_v5  ;;  %v4086_v26 = vrot.slane %v1222_v49, %v3671_v5  ;;  %v1238_v51 = vcombine.low %v4059_v8, %v4080_v55 }
 0x308   :  { %v4070_v29 = vrot.slane %v1359_v48, %v3671_v5  ;;  %v4073_v4 = vrot.slane %v1207_v58, %v3671_v5  ;;  %v3243_v57 = vpack.i.bf16 %v1171_v63, %v1035_v33  ;;  %v4095_v48 = vrot.slane %v1223_v7, %v3671_v5 }
 0x309   :  { %v4054_v56 = vpop.permute.xlu1 %896  ;;  %v883_v12 = vpop.permute.xlu0 %882  ;;  %v4102_v58 = vrot.slane %v1206_v60, %v3671_v5  ;;  %v1255_v7 = vcombine.high %v4063_v21, %v4083_v24  ;;  %v4113_v63 = vrot.slane %v1358_v22, %v3671_v5  ;;  %v1031_v60 = vcombine.high %v4019_v18, %v4050_v52 }
 0x30a   :  { %v1343_v11 = vcombine.high %v3960_v28, %v883_v12  ;;  %v1342_v37 = vcombine.low %v3960_v28, %v883_v12  ;;  %v1133_v28 = vrot.slane %v1119_v53, %v3967_v40  ;;  %3244 = vrot.lane.b32.xlu1 %v3243_v57, %s3423_s28  ;;  %v4108_v12 = vrot.slane %v1102_v39, %v3967_v40 }
 0x30b   :  { %v1287_v2 = vcombine.high %v4073_v4, %v4095_v48  ;;  %v1036_v49 = vcombine.low %v3991_v19, %v1029_v35  ;;  %v1168_v47 = vcombine.low %v1117_v62, %v4009_v25  ;;  %v1270_v52 = vcombine.low %v4102_v58, %v4086_v26 }
 0x30c   :  { %v4077_v43 = vrot.slane %v1343_v11, %v3671_v5  ;;  %4729 = vst [vmem:[#allocation18_spill] sm:$0xff] %v4108_v12  ;;  %v4118_v53 = vrot.slane %v1342_v37, %v3671_v5  ;;  %v1167_v39 = vcombine.high %v4108_v12, %v3997_v54  ;;  %v1172_v37 = vcombine.low %v1133_v28, %v4003_v46 }
 0x30d   :  { %v4088_v16 = vpop.permute.xlu1 %1787  ;;  %v4090_v61 = vpop.permute.xlu0 %894  ;;  %v1173_v33 = vcombine.high %v1133_v28, %v4003_v46  ;;  %v4143_v54 = vrot.slane %v1287_v2, %v3967_v40  ;;  %v1033_v0 = vcombine.high %v4025_v30, %v4038_v31  ;;  %v4156_v46 = vrot.slane %v1255_v7, %v3967_v40 }
 0x30e   :  { %v1423_v59 = vcombine.high %v4077_v43, %v4070_v29  ;;  %v3223_v18 = vpack.i.bf16 %v1167_v39, %v1031_v60  ;;  %v1406_v12 = vcombine.low %v4118_v53, %v4113_v63  ;;  %v3248_v10 = vpack.i.bf16 %v1172_v37, %v1036_v49 }
 0x30f   :  { %v3253_v9 = vpack.i.bf16 %v1173_v33, %v1037_v34  ;;  %v1169_v60 = vcombine.high %v1117_v62, %v4009_v25  ;;  %v1034_v34 = vcombine.low %v3979_v1, %v4041_v14  ;;  %v1446_v25 = vcombine.low %v3962_v36, %v4090_v61 }
 0x310   :  { %v4121_v11 = vrot.slane %v1423_v59, %v3967_v40  ;;  %v1032_v59 = vcombine.low %v4025_v30, %v4038_v31  ;;  %3224 = vrot.lane.b32.xlu0 %v3223_v18, %s3414_s23  ;;  %3249 = vrot.lane.b32.xlu1 %v3248_v10, %s3424_s29  ;;  %v1170_v18 = vcombine.low %v4013_v20, %v3985_v41 }
 0x311   :  { %v4129_v22 = vpop.permute.xlu1 %1799  ;;  %v4131_v57 = vpop.permute.xlu0 %1785  ;;  %v3233_v30 = vpack.i.bf16 %v1169_v60, %v1033_v0  ;;  %v4168_v31 = vrot.slane %v1238_v51, %v3967_v40  ;;  %v4171_v35 = vrot.slane %v1270_v52, %v3967_v40  ;;  %v1309_v10 = vcombine.high %v4156_v46, %v4143_v54 }
 0x312   :  { %v3228_v42 = vpack.i.bf16 %v1168_v47, %v1032_v59  ;;  %v1445_v47 = vcombine.high %v4035_v17, %v4121_v11  ;;  %v3238_v62 = vpack.i.bf16 %v1170_v18, %v1034_v34  ;;  %v4730_v1 = vcombine.low %v3793_v6, %v3810_v50 }
 0x313   :  { %v4182_v41 = vrot.slane %v1406_v12, %v3967_v40  ;;  %v1462_v0 = vcombine.low %v3958_v27, %v4054_v56  ;;  %v1447_v12 = vcombine.high %v3962_v36, %v4090_v61  ;;  %v4199_v7 = vrot.slane %v1446_v25, %v3671_v5 }
 0x314   :  { %v4179_v14 = vrot.slane %v4730_v1, %v3967_v40  ;;  %3229 = vrot.lane.b32.xlu0 %v3228_v42, %s3425_s30  ;;  %3254 = vrot.lane.b32.xlu1 %v3253_v9, %s3426_s4  ;;  %v3288_v51 = vpack.i.bf16 %v1445_v47, %v1309_v10  ;;  %v1463_v42 = vcombine.high %v3958_v27, %v4054_v56  ;;  %v4712_v59 = vmov 0.0|0.0  }
 0x315   :  { %v4151_v39 = vpop.permute.xlu1 %1831  ;;  %v4153_v19 = vpop.permute.xlu0 %1797  ;;  %v4204_v2 = vrot.slane %v1462_v0, %v3671_v5  ;;  %v4213_v36 = vrot.slane %v1447_v12, %v3671_v5  ;;  %3190 = vmatprep.subr.bf16.mxu0 %v4712_v59  ;;  %3196 = vmatprep.subr.bf16.mxu1 %v4712_v59  ;;  %v1407_v60 = vcombine.high %v4118_v53, %v4113_v63 }
 0x316   :  { %v4218_v27 = vrot.slane %v1463_v42, %v3671_v5  ;;  %v1271_v18 = vcombine.high %v4102_v58, %v4086_v26  ;;  %v1239_v10 = vcombine.high %v4059_v8, %v4080_v55  ;;  %v1303_v1 = vcombine.high %v4168_v31, %v4171_v35 }
 0x317   :  { %v1479_v61 = vcombine.high %v4199_v7, %v4204_v2  ;;  %v1421_v63 = vrot.slane %v1407_v60, %v3967_v40  ;;  %v4731_v8 = vcombine.high %v3793_v6, %v3810_v50 }
 0x318   :  { %3234 = vrot.lane.b32.xlu0 %v3233_v30, %s3427_s5  ;;  %3289 = vrot.lane.b32.xlu1 %v3288_v51, %s3426_s4  ;;  %v1494_v47 = vcombine.low %v4213_v36, %v4218_v27  ;;  %v1285_v58 = vrot.slane %v1271_v18, %v3967_v40  ;;  %v1253_v42 = vrot.slane %v1239_v10, %v3967_v40 }
 0x319   :  { %v4187_v20 = vpop.permute.xlu1 %1843  ;;  %v4189_v52 = vpop.permute.xlu0 %1829  ;;  %v4232_v34 = vrot.slane %v1479_v61, %v3967_v40  ;;  %v1389_v55 = vrot.slane %v4731_v8, %v3967_v40  ;;  %v1422_v61 = vcombine.low %v4077_v43, %v4070_v29  ;;  %v1286_v18 = vcombine.low %v4073_v4, %v4095_v48 }
 0x31a   :  { %v4246_v53 = vrot.slane %v1494_v47, %v3967_v40  ;;  %v1304_v50 = vcombine.low %v1253_v42, %v1285_v58  ;;  %v1254_v29 = vcombine.low %v4063_v21, %v4083_v24  ;;  %v1305_v24 = vcombine.high %v1253_v42, %v1285_v58 }
 0x31b   :  { %v1440_v47 = vcombine.low %v1389_v55, %v1421_v63  ;;  %v1430_v4 = vrot.slane %v1422_v61, %v3967_v40 }
 0x31c   :  { %3239 = vrot.lane.b32.xlu0 %v3238_v62, %s3428_s6  ;;  %v1439_v62 = vcombine.high %v4179_v14, %v4182_v41 }
 0x31d   :  { %v4207_v9 = vpop.permute.xlu1 %1871  ;;  %v4209_v33 = vpop.permute.xlu0 %1841  ;;  %v3263_v48 = vpack.i.bf16 %v1440_v47, %v1304_v50 }
 0x31e   :  { %v3258_v60 = vpack.i.bf16 %v1439_v62, %v1303_v1  ;;  %v1441_v62 = vcombine.high %v1389_v55, %v1421_v63  ;;  %v4732_v1 = vcombine.low %v3710_v32, %v3690_v23  ;;  %v1262_v23 = vrot.slane %v1254_v29, %v3967_v40 }
 0x320   :  { %1547 = vrot.lane.b32.xlu0 %v4232_v34, %s3425_s30 }
 0x321   :  { %v4221_v56 = vpop.permute.xlu1 %1883  ;;  %v4223_v37 = vpop.permute.xlu0 %1869 }
 0x324   :  { %1587 = vrot.lane.b32.xlu0 %v4246_v53, %s3428_s6 }
 0x325   :  { %v4238_v25 = vpop.permute.xlu1 %1791  ;;  %v4240_v30 = vpop.permute.xlu0 %1881 }
 0x326   :  { %v1941_v26 = vcombine.low %v4088_v16, %v4238_v25 }
 0x328   :  { %v4268_v28 = vrot.slane %v1941_v26, %v3671_v5  ;;  %3259 = vrot.lane.b32.xlu0 %v3258_v60, %s3414_s23  ;;  %v1294_v26 = vrot.slane %v1286_v18, %v3967_v40  ;;  %v4733_v60 = vcombine.low %v3819_v13, %v3822_v15  ;;  %v4736_v18 = vcombine.low %v3835_v3, %v3842_v38 }
 0x329   :  { %v1804_v0 = vpop.permute.xlu1 %1803  ;;  %v1790_v51 = vpop.permute.xlu0 %1789 }
 0x32a   :  { %v1925_v12 = vcombine.low %v4131_v57, %v1790_v51  ;;  %v4290_v49 = vrot.slane %v4733_v60, %v3967_v40  ;;  %v1926_v21 = vcombine.high %v4131_v57, %v1790_v51  ;;  %v4308_v50 = vrot.slane %v4736_v18, %v3967_v40 }
 0x32b   :  { %v4738_v57 = vcombine.high %v3819_v13, %v3822_v15  ;;  %v1942_v51 = vcombine.high %v4088_v16, %v4238_v25  ;;  %v2045_v42 = vcombine.low %v4129_v22, %v1804_v0  ;;  %v2046_v29 = vcombine.high %v4129_v22, %v1804_v0  ;;  %v4741_v16 = vld [vmem:[#allocation9_spill] sm:$0xff]  ;;  %v4742_v25 = vld [vmem:[#allocation10_spill] sm:$0xff] }
 0x32c   :  { %v4271_v6 = vrot.slane %v1925_v12, %v3671_v5  ;;  %v1398_v12 = vrot.slane %v4732_v1, %v3967_v40  ;;  %4734 = vst [vmem:[#allocation19_spill] sm:$0xff] %v4290_v49  ;;  %3264 = vrot.lane.b32.xlu0 %v3263_v48, %s3425_s30  ;;  %4737 = vst [vmem:[#allocation21_spill] sm:$0xff] %v4308_v50  ;;  %v4740_v13 = vcombine.low %v3849_v44, %v3852_v45 }
 0x32d   :  { %v4274_v8 = vpop.permute.xlu1 %1835  ;;  %v1802_v10 = vpop.permute.xlu0 %1801  ;;  %v4314_v58 = vrot.slane %v4738_v57, %v3967_v40  ;;  %v4743_v1 = vcombine.low %v4741_v16, %v4742_v25  ;;  %v4339_v22 = vrot.slane %v1926_v21, %v3671_v5  ;;  %v1307_v18 = vcombine.high %v1262_v23, %v1294_v26 }
 0x32e   :  { %v1989_v43 = vcombine.low %v4271_v6, %v4268_v28  ;;  %v2029_v63 = vcombine.low %v4153_v19, %v1802_v10  ;;  %v2030_v32 = vcombine.high %v4153_v19, %v1802_v10  ;;  %v3268_v19 = vpack.i.bf16 %v1441_v62, %v1305_v24 }
 0x32f   :  { %v1442_v10 = vcombine.low %v1398_v12, %v1430_v4  ;;  %v4330_v15 = vrot.slane %v4740_v13, %v3967_v40  ;;  %v4336_v62 = vrot.slane %v4743_v1, %v3967_v40  ;;  %v1443_v57 = vcombine.high %v1398_v12, %v1430_v4 }
 0x330   :  { %v4298_v61 = vrot.slane %v1989_v43, %v3967_v40  ;;  %v4739_v43 = vcombine.high %v3835_v3, %v3842_v38  ;;  %3269 = vrot.lane.b32.xlu0 %v3268_v19, %s3427_s5  ;;  %v2037_v3 = vrot.slane %v2029_v63, %v3671_v5  ;;  %v1306_v38 = vcombine.low %v1262_v23, %v1294_v26 }
 0x331   :  { %v4295_v55 = vpop.permute.xlu0 %1833  ;;  %v4302_v47 = vpop.permute.xlu1 %1847  ;;  %v2044_v24 = vrot.slane %v2030_v32, %v3671_v5  ;;  %v1956_v21 = vrot.slane %v1942_v51, %v3671_v5  ;;  %v2053_v13 = vrot.slane %v2045_v42, %v3671_v5  ;;  %v1478_v63 = vcombine.low %v4199_v7, %v4204_v2 }
 0x332   :  { %4735 = vst [vmem:[#allocation20_spill] sm:$0xff] %v4298_v61  ;;  %v4324_v48 = vrot.slane %v4739_v43, %v3967_v40  ;;  %v1444_v43 = vcombine.low %v4035_v17, %v4121_v11  ;;  %v3273_v19 = vpack.i.bf16 %v1442_v10, %v1306_v38  ;;  %v2060_v1 = vrot.slane %v2046_v29, %v3671_v5 }
 0x333   :  { %v1990_v60 = vcombine.high %v4271_v6, %v4268_v28  ;;  %v2165_v26 = vcombine.low %v4189_v52, %v4295_v55  ;;  %v2005_v11 = vcombine.low %v4339_v22, %v1956_v21  ;;  %v2093_v12 = vcombine.low %v2037_v3, %v2053_v13 }
 0x334   :  { %v2094_v23 = vcombine.high %v2037_v3, %v2053_v13  ;;  %3274 = vrot.lane.b32.xlu0 %v3273_v19, %s3428_s6  ;;  %v1308_v7 = vcombine.low %v4156_v46, %v4143_v54  ;;  %v2181_v28 = vcombine.low %v4151_v39, %v4274_v8  ;;  %v2109_v6 = vcombine.low %v2044_v24, %v2060_v1 }
 0x335   :  { %v4343_v0 = vpop.permute.xlu0 %1845  ;;  %v4359_v4 = vpop.permute.xlu1 %1875  ;;  %v2213_v32 = vcombine.low %v4187_v20, %v4302_v47  ;;  %v3278_v42 = vpack.i.bf16 %v1443_v57, %v1307_v18  ;;  %v4378_v3 = vrot.slane %v1478_v63, %v3967_v40  ;;  %v2004_v54 = vrot.slane %v1990_v60, %v3967_v40 }
 0x336   :  { %v2197_v17 = vcombine.low %v4209_v33, %v4343_v0  ;;  %v2349_v10 = vcombine.low %v4207_v9, %v4359_v4  ;;  %v3283_v29 = vpack.i.bf16 %v1444_v43, %v1308_v7  ;;  %v2006_v46 = vcombine.high %v4339_v22, %v1956_v21  ;;  %v4746_v7 = vld [vmem:[#allocation14_spill] sm:$0xff] }
 0x337   :  { %v4383_v38 = vrot.slane %v2165_v26, %v3671_v5  ;;  %v2013_v19 = vrot.slane %v2005_v11, %v3967_v40  ;;  %v2108_v18 = vrot.slane %v2094_v23, %v3967_v40  ;;  %v4393_v43 = vrot.slane %v2093_v12, %v3967_v40 }
 0x338   :  { %v4386_v13 = vrot.slane %v2197_v17, %v3671_v5  ;;  %3279 = vrot.lane.b32.xlu0 %v3278_v42, %s3423_s28  ;;  %v4396_v60 = vrot.slane %v2181_v28, %v3671_v5  ;;  %v2110_v22 = vcombine.high %v2044_v24, %v2060_v1  ;;  %v2117_v21 = vrot.slane %v2109_v6, %v3967_v40  ;;  %v4745_v1 = vld [vmem:[#allocation13_spill] sm:$0xff] }
 0x339   :  { %v4367_v2 = vpop.permute.xlu0 %1873  ;;  %4744 = vst [vmem:[#allocation9_spill] sm:$0xff] %v4393_v43  ;;  %v2221_v63 = vrot.slane %v2213_v32, %v3671_v5  ;;  %v2357_v26 = vrot.slane %v2349_v10, %v3671_v5  ;;  %v2022_v17 = vcombine.high %v4308_v50, %v4298_v61  ;;  %v2158_v11 = vcombine.high %v4393_v43, %v4290_v49 }
 0x33a   :  { %v2333_v51 = vcombine.low %v4223_v37, %v4367_v2  ;;  %v2229_v23 = vcombine.low %v4383_v38, %v4396_v60  ;;  %v4747_v28 = vcombine.low %v4745_v1, %v4746_v7  ;;  %v4748_v32 = vcombine.high %v3849_v44, %v3852_v45 }
 0x33b   :  { %v2261_v24 = vcombine.low %v4386_v13, %v2221_v63  ;;  %v3293_v10 = vpack.i.bf16 %v2158_v11, %v2022_v17  ;;  %v2023_v12 = vcombine.low %v4324_v48, %v2004_v54  ;;  %v2159_v59 = vcombine.low %v2108_v18, %v4314_v58 }
 0x33c   :  { %v2341_v57 = vrot.slane %v2333_v51, %v3671_v5  ;;  %v4414_v6 = vrot.slane %v4747_v28, %v3967_v40  ;;  %v1988_v51 = vrot.slane %v4748_v32, %v3967_v40  ;;  %3284 = vrot.lane.b32.xlu0 %v3283_v29, %s3424_s29  ;;  %v2024_v61 = vcombine.high %v4324_v48, %v2004_v54 }
 0x33d   :  { %v2160_v50 = vcombine.high %v2108_v18, %v4314_v58  ;;  %v2025_v28 = vcombine.low %v4330_v15, %v2013_v19  ;;  %v2161_v49 = vcombine.low %v2117_v21, %v4336_v62  ;;  %v2020_v43 = vrot.slane %v2006_v46, %v3967_v40  ;;  %3294 = vrot.lane.b32.xlu1 %v3293_v10, %s3414_s23 }
 0x33e   :  { %v2397_v42 = vcombine.low %v2341_v57, %v2357_v26  ;;  %v2124_v44 = vrot.slane %v2110_v22, %v3967_v40  ;;  %v4749_v45 = vmov 0.0   ;;  %v3298_v17 = vpack.i.bf16 %v2159_v59, %v2023_v12 }
 0x33f   :  { %v1510_v29 = vcombine.high %v4378_v3, %v4749_v45  ;;  %v3303_v11 = vpack.i.bf16 %v2160_v50, %v2024_v61  ;;  %v3308_v32 = vpack.i.bf16 %v2161_v49, %v2025_v28  ;;  %v4433_v48 = vrot.slane %v2229_v23, %v3967_v40  ;;  %v1886_v23 = vpop.permute.xlu0 %1885  ;;  %3102 = vmatprep.mubr.msk.f32.mxu0 %vm3430_vm13, %v4749_v45 }
 0x340   :  { %v4436_v58 = vrot.slane %v2261_v24, %v3967_v40  ;;  %v4440_v54 = vrot.slane %v2397_v42, %v3967_v40  ;;  %v2026_v46 = vcombine.high %v4330_v15, %v2013_v19  ;;  %v2162_v18 = vcombine.high %v2117_v21, %v4336_v62  ;;  %v1888_v24 = vpop.permute.xlu1 %1887  ;;  %3115 = vmatprep.mubr.msk.f32.mxu1 %vm3430_vm13, %v4749_v45 }
 0x341   :  { %1527 = vrot.lane.b32.xlu0 %v1510_v29, %s3414_s23  ;;  %v4750_v59 = vcombine.high %v4741_v16, %v4742_v25  ;;  %v2398_v61 = vcombine.high %v2341_v57, %v2357_v26  ;;  %v1511_v50 = vcombine.high %v4232_v34, %v4749_v45  ;;  %3299 = vrot.lane.b32.xlu1 %v3298_v17, %s3425_s30 }
 0x342   :  { %v2293_v22 = vcombine.low %v4433_v48, %v4436_v58  ;;  %v2429_v12 = vcombine.low %v4414_v6, %v4440_v54  ;;  %v3313_v15 = vpack.i.bf16 %v2162_v18, %v2026_v46  ;;  %v2027_v19 = vcombine.low %v1988_v51, %v2020_v43 }
 0x343   :  { %v2156_v49 = vrot.slane %v4750_v59, %v3967_v40  ;;  %v2262_v21 = vcombine.high %v4386_v13, %v2221_v63  ;;  %v2430_v16 = vcombine.high %v4414_v6, %v4440_v54  ;;  %v2028_v25 = vcombine.high %v1988_v51, %v2020_v43 }
 0x344   :  { %v2230_v26 = vcombine.high %v4383_v38, %v4396_v60  ;;  %v1512_v42 = vcombine.high %v4246_v53, %v4749_v45  ;;  %v2412_v10 = vrot.slane %v2398_v61, %v3967_v40  ;;  %v2437_v13 = vcombine.low %v4240_v30, %v1886_v23 }
 0x345   :  { %v2163_v62 = vcombine.low %v2124_v44, %v2156_v49  ;;  %1567 = vrot.lane.b32.xlu0 %v1511_v50, %s3427_s5  ;;  %v2164_v57 = vcombine.high %v2124_v44, %v2156_v49  ;;  %3304 = vrot.lane.b32.xlu1 %v3303_v11, %s3427_s5  ;;  %v2294_v63 = vcombine.high %v4433_v48, %v4436_v58 }
 0x346   :  { %v2276_v43 = vrot.slane %v2262_v21, %v3967_v40  ;;  %v2453_v51 = vcombine.low %v4221_v56, %v1888_v24  ;;  %v4751_v53 = vcombine.high %v4745_v1, %v4746_v7  ;;  %v2244_v44 = vrot.slane %v2230_v26, %v3967_v40  ;;  %v4753_v26 = vld [vmem:[#allocation11_spill] sm:$0xff] }
 0x347   :  { %v3318_v34 = vpack.i.bf16 %v2163_v62, %v2027_v19  ;;  %v3323_v28 = vpack.i.bf16 %v2164_v57, %v2028_v25  ;;  %v3328_v38 = vpack.i.bf16 %v2430_v16, %v2294_v63  ;;  %v2445_v29 = vrot.slane %v2437_v13, %v3671_v5 }
 0x348   :  { %v2380_v60 = vrot.slane %v4751_v53, %v3967_v40  ;;  %v2461_v11 = vrot.slane %v2453_v51, %v3671_v5  ;;  %v2334_v46 = vcombine.high %v4223_v37, %v4367_v2  ;;  %v2295_v18 = vcombine.low %v2244_v44, %v2276_v43 }
 0x349   :  { %1607 = vrot.lane.b32.xlu0 %v1512_v42, %s3423_s28  ;;  %3309 = vrot.lane.b32.xlu1 %v3308_v32, %s3428_s6  ;;  %v2350_v59 = vcombine.high %v4207_v9, %v4359_v4  ;;  %v2198_v1 = vcombine.high %v4209_v33, %v4343_v0  ;;  %v2214_v61 = vcombine.high %v4187_v20, %v4302_v47 }
 0x34a   :  { %v2431_v17 = vcombine.low %v2380_v60, %v2412_v10  ;;  %v2432_v49 = vcombine.high %v2380_v60, %v2412_v10  ;;  %v2469_v32 = vcombine.low %v2445_v29, %v2461_v11  ;;  %v2166_v37 = vcombine.high %v4189_v52, %v4295_v55 }
 0x34b   :  { %v2348_v2 = vrot.slane %v2334_v46, %v3671_v5  ;;  %v2438_v50 = vcombine.high %v4240_v30, %v1886_v23  ;;  %v2296_v9 = vcombine.high %v2244_v44, %v2276_v43  ;;  %v2182_v33 = vcombine.high %v4151_v39, %v4274_v8 }
 0x34c   :  { %v3333_v7 = vpack.i.bf16 %v2431_v17, %v2295_v18  ;;  %v2364_v0 = vrot.slane %v2350_v59, %v3671_v5  ;;  %v2212_v4 = vrot.slane %v2198_v1, %v3671_v5  ;;  %v4501_v52 = vrot.slane %v2469_v32, %v3967_v40 }
 0x34d   :  { %3329 = vrot.lane.b32.xlu0 %v3328_v38, %s3414_s23  ;;  %3314 = vrot.lane.b32.xlu1 %v3313_v15, %s3423_s28  ;;  %v2454_v15 = vcombine.high %v4221_v56, %v1888_v24  ;;  %v3338_v20 = vpack.i.bf16 %v2432_v49, %v2296_v9  ;;  %v2228_v30 = vrot.slane %v2214_v61, %v3671_v5 }
 0x34e   :  { %v2180_v55 = vrot.slane %v2166_v37, %v3671_v5  ;;  %v2413_v47 = vcombine.low %v2348_v2, %v2364_v0  ;;  %v2452_v19 = vrot.slane %v2438_v50, %v3671_v5  ;;  %v2470_v39 = vcombine.high %v2445_v29, %v2461_v11 }
 0x34f   :  { %v1495_v8 = vcombine.high %v4213_v36, %v4218_v27  ;;  %v2196_v56 = vrot.slane %v2182_v33, %v3671_v5  ;;  %v2277_v62 = vcombine.low %v2212_v4, %v2228_v30  ;;  %v2468_v21 = vrot.slane %v2454_v15, %v3671_v5  ;;  %v4752_v5 = vld [vmem:[#allocation12_spill] sm:$0xff]  ;;  %v787_v33 = vld [vmem:[%s4692_s2] sm:$0xff] }
 0x350   :  { %v2501_v23 = vcombine.high %v4501_v52, %v4749_v45  ;;  %v2484_v57 = vrot.slane %v2470_v39, %v3967_v40  ;;  %v4754_v24 = vcombine.low %v4752_v5, %v4753_v26  ;;  %v2414_v13 = vcombine.high %v2348_v2, %v2364_v0 }
 0x351   :  { %3334 = vrot.lane.b32.xlu0 %v3333_v7, %s3425_s30  ;;  %3319 = vrot.lane.b32.xlu1 %v3318_v34, %s3424_s29  ;;  %v2245_v16 = vcombine.low %v2180_v55, %v2196_v56  ;;  %v2421_v34 = vrot.slane %v2413_v47, %v3967_v40  ;;  %v2485_v25 = vcombine.low %v2452_v19, %v2468_v21 }
 0x352   :  { %v2285_v36 = vrot.slane %v2277_v62, %v3967_v40  ;;  %v1509_v27 = vrot.slane %v1495_v8, %v3967_v40  ;;  %v2389_v42 = vrot.slane %v4754_v24, %v3967_v40  ;;  %v2278_v43 = vcombine.high %v2212_v4, %v2228_v30 }
 0x353   :  { %v2253_v10 = vrot.slane %v2245_v16, %v3967_v40  ;;  %v2493_v63 = vrot.slane %v2485_v25, %v3967_v40  ;;  %v2246_v53 = vcombine.high %v2180_v55, %v2196_v56  ;;  %v2428_v60 = vrot.slane %v2414_v13, %v3967_v40  ;;  %v4756_v16 = vld [vmem:[#allocation16_spill] sm:$0xff] }
 0x354   :  { %v1513_v51 = vcombine.high %v1509_v27, %v4749_v45  ;;  %v2434_v29 = vcombine.high %v2389_v42, %v2421_v34  ;;  %v2292_v17 = vrot.slane %v2278_v43, %v3967_v40  ;;  %v4755_v46 = vcombine.high %v4752_v5, %v4753_v26 }
 0x355   :  { %3339 = vrot.lane.b32.xlu0 %v3338_v20, %s3427_s5  ;;  %3324 = vrot.lane.b32.xlu1 %v3323_v28, %s3426_s4  ;;  %v2433_v28 = vcombine.low %v2389_v42, %v2421_v34  ;;  %v2297_v38 = vcombine.low %v2253_v10, %v2285_v36  ;;  %v2298_v11 = vcombine.high %v2253_v10, %v2285_v36  ;;  %v3431_v4 = vmov 0   ;;  %v4757_v34 = vld [vmem:[#allocation17_spill] sm:$0xff]  ;;  %v4759_v36 = vld [vmem:[#allocation18_spill] sm:$0xff] }
 0x356   :  { %v2396_v18 = vrot.slane %v4755_v46, %v3967_v40  ;;  %v2260_v59 = vrot.slane %v2246_v53, %v3967_v40  ;;  %v2486_v32 = vcombine.high %v2452_v19, %v2468_v21  ;;  %v2502_v0 = vcombine.high %v2484_v57, %v4749_v45  ;;  %3363 = vset.pattern.permute.xlu0 %v3431_v4 }
 0x357   :  { %v3343_v44 = vpack.i.bf16 %v2433_v28, %v2297_v38  ;;  %v3348_v1 = vpack.i.bf16 %v2434_v29, %v2298_v11  ;;  %v4758_v25 = vcombine.low %v4756_v16, %v4757_v34 }
 0x358   :  { %v2435_v7 = vcombine.low %v2396_v18, %v2428_v60  ;;  %v2299_v49 = vcombine.low %v2260_v59, %v2292_v17  ;;  %v2500_v37 = vrot.slane %v2486_v32, %v3967_v40  ;;  %v2436_v2 = vcombine.high %v2396_v18, %v2428_v60 }
 0x359   :  { %2518 = vrot.lane.b32.xlu0 %v2501_v23, %s3414_s23  ;;  %2538 = vrot.lane.b32.xlu1 %v2484_v57, %s3425_s30  ;;  %v2300_v50 = vcombine.high %v2260_v59, %v2292_v17  ;;  %v2503_v40 = vcombine.high %v2493_v63, %v4749_v45 }
 0x35a   :  { %v3353_v61 = vpack.i.bf16 %v2435_v7, %v2299_v49  ;;  %v2504_v15 = vcombine.high %v2500_v37, %v4749_v45 }
 0x35b   :  { %v3358_v9 = vpack.i.bf16 %v2436_v2, %v2300_v50  ;;  %v4762_v50 = vmov 0.0|0.0  }
 0x35d   :  { %1627 = vrot.lane.b32.xlu0 %v1509_v27, %s3424_s29  ;;  %2578 = vrot.lane.b32.xlu1 %v2493_v63, %s3428_s6  ;;  %v4760_v27 = vld [vmem:[#allocation15_spill] sm:$0xff] }
 0x35e   :  { %v4761_v5 = vcombine.low %v4759_v36, %v4760_v27 }
 0x361   :  { %1647 = vrot.lane.b32.xlu0 %v1513_v51, %s3426_s4  ;;  %3344 = vrot.lane.b32.xlu1 %v3343_v44, %s3428_s6 }
 0x365   :  { %3349 = vrot.lane.b32.xlu1 %v3348_v1, %s3423_s28  ;;  %1697 = vperm.xlu0 %3363, %v787_v33  }
 0x369   :  { %3354 = vrot.lane.b32.xlu1 %v3353_v61, %s3424_s29 }
 0x36d   :  { %2618 = vrot.lane.b32.xlu1 %v2500_v37, %s3424_s29 }
 0x371   :  { %3359 = vrot.lane.b32.xlu1 %v3358_v9, %s3426_s4 }
 0x375   :  { %2558 = vrot.lane.b32.xlu1 %v2502_v0, %s3427_s5 }
 0x379   :  { %2598 = vrot.lane.b32.xlu1 %v2503_v40, %s3423_s28 }
 0x37c   :  { %v3245_v30 = vpop.permute.xlu1 %3244 }
 0x37d   :  { %2638 = vrot.lane.b32.xlu1 %v2504_v15, %s3426_s4  ;;  %v3247_v43 = vunpack.i.h.bf16 %v3245_v30  ;;  %v3246_v51 = vunpack.i.l.bf16 %v3245_v30 }
 0x382   :  { %v3225_v20 = vpop.permute.xlu0 %3224  ;;  %v3250_v47 = vpop.permute.xlu1 %3249 }
 0x383   :  { %v3227_v19 = vunpack.i.h.bf16 %v3225_v20  ;;  %v3226_v39 = vunpack.i.l.bf16 %v3225_v20  ;;  %v3252_v60 = vunpack.i.h.bf16 %v3250_v47  ;;  %v3251_v44 = vunpack.i.l.bf16 %v3250_v47 }
 0x385   :  { %v1655_v57 = vsel %vm1654_vm14, %v4758_v25, %v3226_v39  ;;  %v1656_v26 = vsel %vm1654_vm14, %v4761_v5, %v3227_v19 }
 0x386   :  { %v3230_v55 = vpop.permute.xlu0 %3229  ;;  %v3255_v13 = vpop.permute.xlu1 %3254 }
 0x387   :  { %v3232_v56 = vunpack.i.h.bf16 %v3230_v55  ;;  %v3231_v62 = vunpack.i.l.bf16 %v3230_v55  ;;  %v3257_v11 = vunpack.i.h.bf16 %v3255_v13  ;;  %v3256_v46 = vunpack.i.l.bf16 %v3255_v13 }
 0x389   :  { %v1660_v42 = vsel %vm86_vm0, %v1655_v57, %v3231_v62  ;;  %v1661_v10 = vsel %vm86_vm0, %v1656_v26, %v3232_v56  ;;  %v4763_v62 = vcombine.low %v4179_v14, %v4182_v41 }
 0x38a   :  { %v3235_v8 = vpop.permute.xlu0 %3234  ;;  %v3290_v56 = vpop.permute.xlu1 %3289 }
 0x38b   :  { %v3237_v21 = vunpack.i.h.bf16 %v3235_v8  ;;  %v3236_v23 = vunpack.i.l.bf16 %v3235_v8 }
 0x38d   :  { %v1666_v38 = vsel %vm1665_vm15, %v1660_v42, %v3236_v23  ;;  %v1667_v53 = vsel %vm1665_vm15, %v1661_v10, %v3237_v21  ;;  %v4764_v23 = vcombine.low %v4168_v31, %v4171_v35  ;;  %v3292_v31 = vunpack.i.h.bf16 %v3290_v56 }
 0x38e   :  { %v3240_v24 = vpop.permute.xlu0 %3239  ;;  %v3291_v35 = vunpack.i.l.bf16 %v3290_v56 }
 0x38f   :  { %v3242_v63 = vunpack.i.h.bf16 %v3240_v24  ;;  %v3241_v28 = vunpack.i.l.bf16 %v3240_v24 }
 0x391   :  { %v1672_v29 = vsel %vm1671_vm1, %v1666_v38, %v3241_v28  ;;  %v1673_v17 = vsel %vm1671_vm1, %v1667_v53, %v3242_v63 }
 0x392   :  { %v1678_v18 = vsel %vm1677_vm2, %v1672_v29, %v3246_v51  ;;  %v1679_v59 = vsel %vm1677_vm2, %v1673_v17, %v3247_v43  ;;  %v4570_v1 = vpop.permute.xlu0 %1547 }
 0x393   :  { %v1684_v7 = vsel %vm1683_vm3, %v1678_v18, %v3251_v44  ;;  %v1685_v49 = vsel %vm1683_vm3, %v1679_v59, %v3252_v60 }
 0x394   :  { %v1690_v32 = vsel %vm1689_vm4, %v1684_v7, %v3256_v46  ;;  %v1691_v61 = vsel %vm1689_vm4, %v1685_v49, %v3257_v11 }
 0x395   :  { %v3191_v37 = vpack.c.bf16 %v1691_v61, %v1690_v32 }
 0x396   :  { %v4576_v2 = vpop.permute.xlu0 %1587 }
 0x397   :  { %3192 = vmatpush3.bf16.msra.mxu0 %v3191_v37 }
 0x398   :  { %3193 = vmatprep.subr.bf16.mxu0 %v4762_v50 }
 0x39a   :  { %v3260_v9 = vpop.permute.xlu0 %3259 }
 0x39b   :  { %v3262_v40 = vunpack.i.h.bf16 %v3260_v9  ;;  %v3261_v15 = vunpack.i.l.bf16 %v3260_v9 }
 0x39d   :  { %v1658_v21 = vsel %vm1654_vm14, %v4763_v62, %v3262_v40  ;;  %v1657_v16 = vsel %vm1654_vm14, %v4764_v23, %v3261_v15  ;;  %v4765_v15 = vld [vmem:[#allocation9_spill] sm:$0xff] }
 0x39e   :  { %v3265_v33 = vpop.permute.xlu0 %3264 }
 0x39f   :  { %v3267_v20 = vunpack.i.h.bf16 %v3265_v33  ;;  %v3266_v30 = vunpack.i.l.bf16 %v3265_v33 }
 0x3a1   :  { %v1662_v57 = vsel %vm86_vm0, %v1657_v16, %v3266_v30  ;;  %v1663_v36 = vsel %vm86_vm0, %v1658_v21, %v3267_v20  ;;  %v4766_v20 = vld [vmem:[#allocation19_spill] sm:$0xff] }
 0x3a2   :  { %v3270_v0 = vpop.permute.xlu0 %3269  ;;  %v4767_v30 = vcombine.low %v4765_v15, %v4766_v20 }
 0x3a3   :  { %v3272_v55 = vunpack.i.h.bf16 %v3270_v0  ;;  %v3271_v47 = vunpack.i.l.bf16 %v3270_v0 }
 0x3a5   :  { %v1668_v27 = vsel %vm1665_vm15, %v1662_v57, %v3271_v47  ;;  %v1669_v5 = vsel %vm1665_vm15, %v1663_v36, %v3272_v55  ;;  %v4768_v47 = vld [vmem:[#allocation21_spill] sm:$0xff] }
 0x3a6   :  { %v3275_v4 = vpop.permute.xlu0 %3274 }
 0x3a7   :  { %v3277_v39 = vunpack.i.h.bf16 %v3275_v4  ;;  %v3276_v8 = vunpack.i.l.bf16 %v3275_v4 }
 0x3a9   :  { %v1674_v14 = vsel %vm1671_vm1, %v1668_v27, %v3276_v8  ;;  %v1675_v41 = vsel %vm1671_vm1, %v1669_v5, %v3277_v39 }
 0x3aa   :  { %v3280_v19 = vpop.permute.xlu0 %3279 }
 0x3ab   :  { %v3282_v34 = vunpack.i.h.bf16 %v3280_v19  ;;  %v3281_v25 = vunpack.i.l.bf16 %v3280_v19  ;;  %v4769_v19 = vld [vmem:[#allocation20_spill] sm:$0xff] }
 0x3ac   :  { %v4770_v39 = vcombine.low %v4768_v47, %v4769_v19 }
 0x3ad   :  { %v1680_v10 = vsel %vm1677_vm2, %v1674_v14, %v3281_v25  ;;  %v1681_v13 = vsel %vm1677_vm2, %v1675_v41, %v3282_v34 }
 0x3ae   :  { %v3285_v26 = vpop.permute.xlu0 %3284 }
 0x3af   :  { %v3287_v24 = vunpack.i.h.bf16 %v3285_v26  ;;  %v3286_v42 = vunpack.i.l.bf16 %v3285_v26  ;;  %v3295_v63 = vpop.permute.xlu1 %3294 }
 0x3b0   :  { %v3297_v7 = vunpack.i.h.bf16 %v3295_v63  ;;  %v3296_v49 = vunpack.i.l.bf16 %v3295_v63 }
 0x3b1   :  { %v1686_v28 = vsel %vm1683_vm3, %v1680_v10, %v3286_v42  ;;  %v1687_v43 = vsel %vm1683_vm3, %v1681_v13, %v3287_v24 }
 0x3b2   :  { %v1692_v38 = vsel %vm1689_vm4, %v1686_v28, %v3291_v35  ;;  %v1693_v53 = vsel %vm1689_vm4, %v1687_v43, %v3292_v31  ;;  %v2646_v55 = vsel %vm1654_vm14, %v4767_v30, %v3297_v7  ;;  %v2645_v8 = vsel %vm1654_vm14, %v4770_v39, %v3296_v49 }
 0x3b3   :  { %v1528_v51 = vpop.permute.xlu0 %1527  ;;  %v3194_v60 = vpack.c.bf16 %v1693_v53, %v1692_v38  ;;  %v3300_v44 = vpop.permute.xlu1 %3299 }
 0x3b4   :  { %v3302_v32 = vunpack.i.h.bf16 %v3300_v44  ;;  %v3301_v61 = vunpack.i.l.bf16 %v3300_v44  ;;  %v1659_v27 = vsel %vm1654_vm14, %v4378_v3, %v1528_v51 }
 0x3b5   :  { %3195 = vmatpush3.bf16.msra.mxu0 %v3194_v60  ;;  %v1664_v28 = vsel %vm86_vm0, %v1659_v27, %v4570_v1  ;;  %v786_v1 = vld [vmem:[%s4691_s1] sm:$0xff]  ;;  %s3432_s1 = smov [#allocation6]  }
 0x3b6   :  { %3100 = vmatprep.subr.mxu0 %v4749_v45  ;;  %v2650_v21 = vsel %vm86_vm0, %v2645_v8, %v3301_v61  ;;  %v2651_v23 = vsel %vm86_vm0, %v2646_v55, %v3302_v32  ;;  %s2764_s10 = sshll.u32 %s3432_s1, 4  ;;  %s2765_s10 = int_to_ptr.vmem [resolvable:$true] %s2764_s10 }
 0x3b7   :  { %v1568_v29 = vpop.permute.xlu0 %1567  ;;  %v3305_v17 = vpop.permute.xlu1 %3304  ;;  %s3386_s11 = scalar_lea.vmem %s2765_s10, 256  ;;  %p3391_p9 = scmp.lt.s32.totalorder %s2765_s10, %s2765_s10 }
 0x3b8   :  { %v3307_v9 = vunpack.i.h.bf16 %v3305_v17  ;;  %v3306_v33 = vunpack.i.l.bf16 %v3305_v17  ;;  %v1670_v38 = vsel %vm1665_vm15, %v1664_v28, %v1568_v29  ;;  %p3387_p8 = scmp.ne.s32.totalorder %s2765_s10, %s3386_s11  ;;  %p3392_p10 = scmp.lt.s32.totalorder %s3386_s11, %s3386_s11 }
 0x3b9   :  { %v1676_v60 = vsel %vm1671_vm1, %v1670_v38, %v4576_v2 }
 0x3ba   :  { %v2655_v57 = vsel %vm1665_vm15, %v2650_v21, %v3306_v33  ;;  %v2656_v36 = vsel %vm1665_vm15, %v2651_v23, %v3307_v9  ;;  %p3393_p11 = por %p3392_p10, %p3391_p9 }
 0x3bb   :  { %v1608_v11 = vpop.permute.xlu0 %1607  ;;  %v3310_v46 = vpop.permute.xlu1 %3309 }
 0x3bc   :  { %v3312_v0 = vunpack.i.h.bf16 %v3310_v46  ;;  %v3311_v4 = vunpack.i.l.bf16 %v3310_v46  ;;  %v1682_v17 = vsel %vm1677_vm2, %v1676_v60, %v1608_v11  ;;  %p3394_p12 = pnand %p3393_p11, %p3387_p8 }
 0x3be   :  { %v2660_v5 = vsel %vm1671_vm1, %v2655_v57, %v3311_v4  ;;  %v2661_v26 = vsel %vm1671_vm1, %v2656_v36, %v3312_v0 }
 0x3bf   :  { %v4600_v18 = vpop.permute.xlu0 %3329  ;;  %v3315_v59 = vpop.permute.xlu1 %3314 }
 0x3c0   :  { %v3317_v56 = vunpack.i.h.bf16 %v3315_v59  ;;  %v3316_v62 = vunpack.i.l.bf16 %v3315_v59  ;;  %v3332_v11 = vunpack.i.h.bf16 %v4600_v18  ;;  %v3331_v49 = vunpack.i.l.bf16 %v4600_v18 }
 0x3c2   :  { %v2665_v41 = vsel %vm1677_vm2, %v2660_v5, %v3316_v62  ;;  %v2666_v24 = vsel %vm1677_vm2, %v2661_v26, %v3317_v56  ;;  %v2648_v15 = vsel %vm1654_vm14, %v2429_v12, %v3332_v11  ;;  %v2647_v20 = vsel %vm1654_vm14, %v2293_v22, %v3331_v49 }
 0x3c3   :  { %v4602_v37 = vpop.permute.xlu0 %3334  ;;  %v3320_v40 = vpop.permute.xlu1 %3319 }
 0x3c4   :  { %v3322_v16 = vunpack.i.h.bf16 %v3320_v40  ;;  %v3321_v34 = vunpack.i.l.bf16 %v3320_v40  ;;  %v3337_v32 = vunpack.i.h.bf16 %v4602_v37  ;;  %v3336_v61 = vunpack.i.l.bf16 %v4602_v37 }
 0x3c6   :  { %v2670_v35 = vsel %vm1683_vm3, %v2665_v41, %v3321_v34  ;;  %v2671_v10 = vsel %vm1683_vm3, %v2666_v24, %v3322_v16  ;;  %v2652_v55 = vsel %vm86_vm0, %v2647_v20, %v3336_v61  ;;  %v2653_v37 = vsel %vm86_vm0, %v2648_v15, %v3337_v32 }
 0x3c7   :  { %v3340_v25 = vpop.permute.xlu0 %3339  ;;  %v3325_v14 = vpop.permute.xlu1 %3324 }
 0x3c8   :  { %v3327_v42 = vunpack.i.h.bf16 %v3325_v14  ;;  %v3326_v31 = vunpack.i.l.bf16 %v3325_v14  ;;  %v3342_v9 = vunpack.i.h.bf16 %v3340_v25  ;;  %v3341_v33 = vunpack.i.l.bf16 %v3340_v25 }
 0x3ca   :  { %v2675_v63 = vsel %vm1689_vm4, %v2670_v35, %v3326_v31  ;;  %v2676_v3 = vsel %vm1689_vm4, %v2671_v10, %v3327_v42  ;;  %v2657_v39 = vsel %vm1665_vm15, %v2652_v55, %v3341_v33  ;;  %v2658_v8 = vsel %vm1665_vm15, %v2653_v37, %v3342_v9 }
 0x3cb   :  { %v2519_v13 = vpop.permute.xlu0 %2518  ;;  %v3197_v43 = vpack.c.bf16 %v2676_v3, %v2675_v63  ;;  %v2539_v51 = vpop.permute.xlu1 %2538 }
 0x3cc   :  { %v2649_v23 = vsel %vm1654_vm14, %v4501_v52, %v2519_v13 }
 0x3cd   :  { %3198 = vmatpush3.bf16.msra.mxu1 %v3197_v43  ;;  %v2654_v25 = vsel %vm86_vm0, %v2649_v23, %v2539_v51 }
 0x3ce   :  { %3199 = vmatprep.subr.bf16.mxu1 %v4762_v50 }
 0x3cf   :  { %v1628_v53 = vpop.permute.xlu0 %1627  ;;  %v2579_v44 = vpop.permute.xlu1 %2578 }
 0x3d0   :  { %v1688_v46 = vsel %vm1683_vm3, %v1682_v17, %v1628_v53 }
 0x3d3   :  { %v1648_v59 = vpop.permute.xlu0 %1647  ;;  %v3345_v50 = vpop.permute.xlu1 %3344 }
 0x3d4   :  { %v1694_v29 = vsel %vm1689_vm4, %v1688_v46, %v1648_v59  ;;  %v3347_v0 = vunpack.i.h.bf16 %v3345_v50  ;;  %v3346_v4 = vunpack.i.l.bf16 %v3345_v50 }
 0x3d5   :  { %3101 = vmatpush3.msk.msra.mxu0 %vm1704_vm5, %v1694_v29 }
 0x3d6   :  { %3103 = vmatmul.mubr.msk.f32.vlgmr.msra.gmra.mrb[24].mxu0 %vm1700_vm6, %v786_v1  ;;  %v2662_v6 = vsel %vm1671_vm1, %v2657_v39, %v3346_v4  ;;  %v2663_v54 = vsel %vm1671_vm1, %v2658_v8, %v3347_v0 }
 0x3d7   :  { %v3350_v2 = vpop.permute.xlu1 %3349 }
 0x3d8   :  { %v3352_v18 = vunpack.i.h.bf16 %v3350_v2  ;;  %v3351_v30 = vunpack.i.l.bf16 %v3350_v2 }
 0x3da   :  { %v2667_v48 = vsel %vm1677_vm2, %v2662_v6, %v3351_v30  ;;  %v2668_v58 = vsel %vm1677_vm2, %v2663_v54, %v3352_v18 }
 0x3db   :  { %v3355_v7 = vpop.permute.xlu1 %3354 }
 0x3dc   :  { %v3357_v47 = vunpack.i.h.bf16 %v3355_v7  ;;  %v3356_v19 = vunpack.i.l.bf16 %v3355_v7 }
 0x3de   :  { %v2672_v62 = vsel %vm1683_vm3, %v2667_v48, %v3356_v19  ;;  %v2673_v21 = vsel %vm1683_vm3, %v2668_v58, %v3357_v47 }
 0x3df   :  { %v2619_v40 = vpop.permute.xlu1 %2618 }
 0x3e3   :  { %v3360_v12 = vpop.permute.xlu1 %3359 }
 0x3e4   :  { %v3362_v22 = vunpack.i.h.bf16 %v3360_v12  ;;  %v3361_v56 = vunpack.i.l.bf16 %v3360_v12  ;;  %v1698_v42 = vpop.permute.xlu0 %1697 }
 0x3e6   :  { %v2677_v16 = vsel %vm1689_vm4, %v2672_v62, %v3361_v56  ;;  %v2678_v34 = vsel %vm1689_vm4, %v2673_v21, %v3362_v22 }
 0x3e7   :  { %v3200_v57 = vpack.c.bf16 %v2678_v34, %v2677_v16  ;;  %v2559_v36 = vpop.permute.xlu1 %2558 }
 0x3e8   :  { %v2659_v27 = vsel %vm1665_vm15, %v2654_v25, %v2559_v36 }
 0x3e9   :  { %3201 = vmatpush3.bf16.msra.mxu1 %v3200_v57  ;;  %v2664_v26 = vsel %vm1671_vm1, %v2659_v27, %v2579_v44 }
 0x3ea   :  { %3113 = vmatprep.subr.mxu1 %v4749_v45 }
 0x3eb   :  { %v2599_v5 = vpop.permute.xlu1 %2598 }
 0x3ec   :  { %v2669_v14 = vsel %vm1677_vm2, %v2664_v26, %v2599_v5 }
 0x3ed   :  { %v2674_v52 = vsel %vm1683_vm3, %v2669_v14, %v2619_v40 }
 0x3ef   :  { %v2639_v41 = vpop.permute.xlu1 %2638 }
 0x3f0   :  { %v2679_v24 = vsel %vm1689_vm4, %v2674_v52, %v2639_v41 }
 0x3f1   :  { %3114 = vmatpush3.msk.msra.mxu1 %vm1704_vm5, %v2679_v24 }
 0x3f2   :  { %3116 = vmatmul.mubr.msk.f32.vlgmr.msra.gmra.mrb[24].mxu1 %vm1700_vm6, %v786_v1 }
 0x4a9   :  { %v1774_v31 = vpop.f32.mrb[24].mxu0 }
 0x4aa   :  { %v1775_v35 = vadd.f32 %v1774_v31, %v1698_v42  ;;  %v3104_v10 = vpop.f32.mrb[25].mxu0 }
 0x4ac   :  { %vm1778_vm0 = vcmp.gt.f32.partialorder %v1775_v35, 0.0  ;;  %v1779_v45 = vmul.f32 0.01, %v1775_v35 }
 0x4ae   :  { %v1780_v13 = vsel %vm1778_vm0, %v1775_v35, %v1779_v45 }
 0x4af   :  { %2757 = vst.msk [vmem:[#allocation6] sm:$0xff] %vm2756_vm7, %v1780_v13 }
 0x4c5   :  { %v2749_v63 = vpop.f32.mrb[24].mxu1 }
 0x4c6   :  { %v2750_v3 = vadd.f32 %v2749_v63, %v1698_v42  ;;  %v3117_v28 = vpop.f32.mrb[25].mxu1 }
 0x4c8   :  { %vm2753_vm8 = vcmp.gt.f32.partialorder %v2750_v3, 0.0  ;;  %v2754_v43 = vmul.f32 0.01, %v2750_v3 }
 0x4ca   :  { %v2755_v51 = vsel %vm2753_vm8, %v2750_v3, %v2754_v43 }
 0x4cb   :  { %2758 = vst.msk [vmem:[#allocation6 + $0x8] sm:$0xff] %vm2756_vm7, %v2755_v51 }
 0x4cc   :  { %3397 = shalt.err (!%p3394_p12)
}
 0x4cd   :  { %s3398_s14 = scalar_lea.hbm %s4693_s3, 256 }
 0x4ce   :  { %p3399_p13 = scmp.ne.s32.totalorder %s4693_s3, %s3398_s14  ;;  %p3402_p0 = scmp.lt.u32.totalorder %s3398_s14, %s4693_s3 }
 0x4d0   :  { %p3404_p1 = pnand %p3402_p0, %p3399_p13 }
 0x4d2   :  { %3407 = shalt.err (!%p3404_p1)
}
 0x4d3   :  { %2770 = dma.vmem_to_hbm [thread:$0]  %s2765_s10, 256, %s4693_s3, [#allocation5], %s3413_s22, %s3413_s22, %s3414_s23  }
 0x4d4   :  { %3410 = dma.done.wait [#allocation5], 256  }
 0x4d5   :  { %3411 = vsyncadd [#allocation5], 4294967040 }
 0x4d6   :  { %2774 = vsyncpa [#allocation4], 1 }
 0x4d7   :  { %2775 = vsyncpa [#allocation5], 1 }

</bundles_post_ra>
